<compile_context>
chip_gen: v5e
topology: v5e:2x2
jax: 0.10.0
libtpu: 0.0.40
codegen_flags: <defaults>
</compile_context>

<pallas_src>
import functools

import numpy as np
import jax
import jax.numpy as jnp
from jax.experimental import pallas as pl
from jax.experimental.pallas import tpu as pltpu  # noqa: F401  (TPU backend assumed)

_LANES = 128       # lane width (padded fc output dim)
_FEAT_PAD = 128    # conv4 C_out padded 64 -> 128 so the feature slab is lane-dense

_CONV_CFG = (
    # name, C_in (None = initial_num_channels), C_out, k, stride, dilation
    ("conv1", None, 256, 3, 2, 2),
    ("conv2", 256, 256, 3, 2, 2),
    ("conv3", 256, 256, 3, 2, 1),
    ("conv4", 256, 64, 2, 2, 1),
)


def _layer_geometry(in_channels, seq_len):
    geo, L = [], seq_len
    for name, cin, cout, k, s, d in _CONV_CFG:
        cin = in_channels if cin is None else cin
        L_out = (L - d * (k - 1) - 1) // s + 1
        geo.append(dict(name=name, cin=cin, cout=cout, k=k, stride=s, dil=d,
                        L_in=L, L_out=L_out))
        L = L_out
    return geo


def _full_spec(shape):
    n = len(shape)
    return pl.BlockSpec(shape, lambda *_: (0,) * n)


# ----------------------------------------------------------------------------
# Fused kernel: conv1..conv4 (+ReLU; Dropout = identity at inference) + fc.
# Single gridless invocation; every ref is a whole-array VMEM block.
# ----------------------------------------------------------------------------
def _make_fused_kernel(B, geo, num_classes):
    g1, g2, g3, g4 = geo
    offs, o = [], 0
    for g in geo:                      # static tap offsets into the sel slab
        offs.append(o)
        o += g["k"]
    k4c = g4["k"] * g4["cin"]          # 512: row split between conv4 and fc weights

    def kernel(x_ref, sel_ref, w1_ref, w23_ref, w4fc_ref, bias_ref, out_ref):
        bias = bias_ref[...]                                   # (5, 256)
        h = x_ref[...]                                         # (B*L0, C_in0) slab

        def gather(g, off, h):
            # Block-diagonal one-hot "im2col" rides the MXU: one dot per tap
            # for the WHOLE batch (batch folded into the matmul M dimension).
            return [jnp.dot(sel_ref[off + t, :B * g["L_out"], :B * g["L_in"]], h,
                            preferred_element_type=jnp.float32)
                    for t in range(g["k"])]

        # conv1: C_in=4 is sub-lane-tile -> per-tap weight matmuls (tiny).
        taps = gather(g1, offs[0], h)
        acc = jnp.dot(taps[0], w1_ref[0], preferred_element_type=jnp.float32)
        for t in range(1, g1["k"]):
            acc = acc + jnp.dot(taps[t], w1_ref[t], preferred_element_type=jnp.float32)
        h = jnp.maximum(acc + bias[0:1, :], 0.0)

        # conv2 / conv3: taps lane-concatenated (k*256, tile-aligned -> free) and
        # contracted with pre-stacked (k*256, 256) weights in ONE dot per layer.
        for li, g in ((0, g2), (1, g3)):
            taps = gather(g, offs[1 + li], h)
            x_cat = jnp.concatenate(taps, axis=1)              # (B*L_out, k*256)
            acc = jnp.dot(x_cat, w23_ref[li], preferred_element_type=jnp.float32)
            h = jnp.maximum(acc + bias[1 + li:2 + li, :], 0.0)
            # Dropout(0.2) after conv2/conv3 ReLU is identity at inference.

        # conv4: stacked-K dot; C_out zero-padded 64 -> 128 lanes.
        taps = gather(g4, offs[3], h)
        x_cat = jnp.concatenate(taps, axis=1)                  # (B, 512)
        acc = jnp.dot(x_cat, w4fc_ref[:k4c, :], preferred_element_type=jnp.float32)
        h = jnp.maximum(acc + bias[3:4, :_FEAT_PAD], 0.0)      # (B, 128) features

        # fc head: full (128,128) MXU tile (padded rows multiply zero features).
        # fc1 exists in the PyTorch module but is unused by forward().
        logits = jnp.dot(h, w4fc_ref[k4c:, :], preferred_element_type=jnp.float32)
        logits = logits + bias[4:5, :_LANES]
        out_ref[...] = logits[:, :num_classes]                 # masked (B, nc) store

    return kernel


# ----------------------------------------------------------------------------
# Parameter init (PyTorch layout) + ONE-TIME repack into the kernel layout.
# ----------------------------------------------------------------------------
def _uniform(key, shape, bound):
    return jax.random.uniform(key, shape, jnp.float32, minval=-bound, maxval=bound)


def init_params(key, initial_num_channels, num_classes):
    """PyTorch-layout params (Conv1d: (C_out, C_in, k); Linear: (out, in))."""
    keys = jax.random.split(key, 12)
    params, i = {}, 0
    for name, cin, cout, k, _, _ in _CONV_CFG:
        cin = initial_num_channels if cin is None else cin
        bound = 1.0 / float(cin * k) ** 0.5
        params[name + "_w"] = _uniform(keys[i], (cout, cin, k), bound); i += 1
        params[name + "_b"] = _uniform(keys[i], (cout,), bound); i += 1
    bound = 1.0 / 64.0 ** 0.5
    # fc1 is defined in the PyTorch module but unused in forward(); kept for parity.
    params["fc1_w"] = _uniform(keys[i], (64, 64), bound); i += 1
    params["fc1_b"] = _uniform(keys[i], (64,), bound); i += 1
    params["fc_w"] = _uniform(keys[i], (num_classes, 64), bound); i += 1
    params["fc_b"] = _uniform(keys[i], (num_classes,), bound); i += 1
    return params


def _build_sel_slab(geo, B):
    """Block-diagonal one-hot selection matrices for every (layer, tap), packed
    into one zero-padded f32 slab so all im2col constants arrive in one DMA."""
    total = sum(g["k"] for g in geo)
    max_r = max(B * g["L_out"] for g in geo)
    max_c = max(B * g["L_in"] for g in geo)
    slab = np.zeros((total, max_r, max_c), np.float32)
    idx = 0
    for g in geo:
        i = np.arange(g["L_out"])
        for t in range(g["k"]):
            for b in range(B):
                slab[idx, b * g["L_out"] + i,
                     b * g["L_in"] + i * g["stride"] + t * g["dil"]] = 1.0
            idx += 1
    return jnp.asarray(slab)


def pack_params(params, *, batch_size, in_channels, seq_len, num_classes):
    """One-time repack (at init, NOT per forward) into the kernel compute layout."""
    geo = _layer_geometry(in_channels, seq_len)
    assert geo[-1]["L_out"] == 1, "conv stack must end at length 1 (squeeze(dim=2))"
    packed = {}

    def stacked(w):                              # (C_out, C_in, k) -> (k*C_in, C_out)
        cout, cin, k = w.shape
        return jnp.transpose(w, (2, 1, 0)).reshape(k * cin, cout)

    # conv1 kept per-tap: (k, C_in, C_out) = (3, 4, 256).
    packed["w1"] = jnp.transpose(params["conv1_w"], (2, 1, 0)).astype(jnp.float32)
    # conv2/conv3 stacked-K weights stored together -> one DMA: (2, 768, 256).
    packed["w23"] = jnp.stack([stacked(params["conv2_w"]),
                               stacked(params["conv3_w"])]).astype(jnp.float32)
    # conv4 stacked-K (C_out padded 64->128) fused with the pre-transposed,
    # 128-lane-padded fc weights into a single (640, 128) slab -> one DMA.
    w4 = stacked(params["conv4_w"])                              # (512, 64)
    cout4 = w4.shape[1]
    nc, feat = params["fc_w"].shape
    w4fc = jnp.zeros((w4.shape[0] + _FEAT_PAD, _LANES), jnp.float32)
    w4fc = w4fc.at[:w4.shape[0], :cout4].set(w4)
    w4fc = w4fc.at[w4.shape[0]:w4.shape[0] + feat, :nc].set(params["fc_w"].T)
    packed["w4fc"] = w4fc
    # All biases (conv1-4 + fc head) in one (5, 256) slab -> one DMA.
    bias = jnp.zeros((5, 256), jnp.float32)
    bias = bias.at[0, :].set(params["conv1_b"])
    bias = bias.at[1, :].set(params["conv2_b"])
    bias = bias.at[2, :].set(params["conv3_b"])
    bias = bias.at[3, :cout4].set(params["conv4_b"])
    bias = bias.at[4, :nc].set(params["fc_b"])
    packed["bias"] = bias
    # Host-side im2col one-hot constants (replaces in-kernel iota/compare ops).
    packed["sel"] = _build_sel_slab(geo, batch_size)
    return packed


def _cost_estimate(geo, B, args, num_classes):
    flops = 0
    for g in geo:
        M = B * g["L_out"]
        cout = _FEAT_PAD if g["name"] == "conv4" else g["cout"]
        flops += g["k"] * 2 * M * (B * g["L_in"]) * g["cin"]     # one-hot gathers
        flops += 2 * M * g["k"] * g["cin"] * cout                # conv matmul(s)
    flops += 2 * B * _FEAT_PAD * _LANES                          # fc head
    bytes_accessed = sum(int(a.size) * a.dtype.itemsize for a in args)
    bytes_accessed += B * num_classes * 4
    return pl.CostEstimate(flops=int(flops), transcendentals=0,
                           bytes_accessed=int(bytes_accessed))


# ----------------------------------------------------------------------------
# Forward pass matching SoftMax_1D.forward (eval mode).
# ----------------------------------------------------------------------------
def softmax_1d_forward(packed, x, *, num_classes):
    """x: (B, C_in, L) float32 in the PyTorch NCL layout.  Returns (B, num_classes)."""
    B, C_in, L = x.shape
    geo = _layer_geometry(C_in, L)
    # Single tiny layout op, fused into the same XLA program as the kernel:
    # NCL -> lane-dense (B*L, C_in) activation slab with batch folded into M.
    x_slab = jnp.transpose(x, (0, 2, 1)).reshape(B * L, C_in)
    args = (x_slab, packed["sel"], packed["w1"], packed["w23"],
            packed["w4fc"], packed["bias"])
    kernel = _make_fused_kernel(B, geo, num_classes)
    # TODO(synk): for larger batches, add a grid axis over batch with
    # dimension_semantics=("parallel",) so v7x's second TensorCore is used.
    return pl.pallas_call(
        kernel,
        out_shape=jax.ShapeDtypeStruct((B, num_classes), jnp.float32),
        in_specs=[_full_spec(a.shape) for a in args],
        out_specs=_full_spec((B, num_classes)),
        cost_estimate=_cost_estimate(geo, B, args, num_classes),
    )(*args)


# Pure-JAX reference (lax conv) for a correctness sanity check.
def _reference_forward(params, x):
    def conv(h, w, b, stride, dilation):
        y = jax.lax.conv_general_dilated(
            h, w, window_strides=(stride,), padding="VALID",
            rhs_dilation=(dilation,),
            dimension_numbers=("NCH", "OIH", "NCH"))
        return jnp.maximum(y + b[None, :, None], 0.0)

    h = conv(x, params["conv1_w"], params["conv1_b"], 2, 2)
    h = conv(h, params["conv2_w"], params["conv2_b"], 2, 2)
    h = conv(h, params["conv3_w"], params["conv3_b"], 2, 1)
    h = conv(h, params["conv4_w"], params["conv4_b"], 2, 1)
    features = h[:, :, 0]
    return features @ params["fc_w"].T + params["fc_b"]


if __name__ == "__main__":
    B = 2
    initial_num_channels = 4
    num_classes = 10
    L = 30  # conv stack reduces spatial length 30 -> 13 -> 5 -> 2 -> 1

    key = jax.random.PRNGKey(0)
    k_params, k_x = jax.random.split(key)
    params = init_params(k_params, initial_num_channels, num_classes)
    packed = pack_params(params, batch_size=B, in_channels=initial_num_channels,
                         seq_len=L, num_classes=num_classes)   # one-time layout repack
    x = jax.random.normal(k_x, (B, initial_num_channels, L), jnp.float32)

    fwd = jax.jit(functools.partial(softmax_1d_forward, num_classes=num_classes))
    out = jax.block_until_ready(fwd(packed, x))

    ref = _reference_forward(params, x)
    assert out.shape == (B, num_classes)
    # Tolerance is bounded by TPU default matmul precision (bf16 MXU passes) on
    # BOTH the kernel dots and the lax.conv reference; genuine layout/indexing
    # bugs show up at >1e-2 here.
    assert jnp.allclose(out, ref, atol=2e-3, rtol=2e-3), \
        float(jnp.max(jnp.abs(out - ref)))

    print("KERNEL_OK")
</pallas_src>

<mosaic_0001>
module attributes {stable_mosaic.version = 11 : i64} {
  func.func @kernel(%arg0: memref<60x4xf32, #tpu.memory_space<vmem>>, %arg1: memref<11x26x60xf32, #tpu.memory_space<vmem>>, %arg2: memref<3x4x256xf32, #tpu.memory_space<vmem>>, %arg3: memref<2x768x256xf32, #tpu.memory_space<vmem>>, %arg4: memref<640x128xf32, #tpu.memory_space<vmem>>, %arg5: memref<5x256xf32, #tpu.memory_space<vmem>>, %arg6: memref<2x10xf32, #tpu.memory_space<vmem>>) attributes {dimension_semantics = [], scalar_prefetch = 0 : i64, scratch_operands = 0 : i64, tpu.core_type = #tpu.core_type<tc>} {
    %c0 = arith.constant 0 : index
    %c0_0 = arith.constant 0 : index
    %0 = vector.load %arg5[%c0, %c0_0] : memref<5x256xf32, #tpu.memory_space<vmem>>, vector<5x256xf32>
    %c0_1 = arith.constant 0 : index
    %c0_2 = arith.constant 0 : index
    %1 = vector.load %arg0[%c0_1, %c0_2] : memref<60x4xf32, #tpu.memory_space<vmem>>, vector<60x4xf32>
    %c0_3 = arith.constant 0 : index
    %c0_4 = arith.constant 0 : index
    %c0_5 = arith.constant 0 : index
    %2 = vector.load %arg1[%c0_3, %c0_4, %c0_5] : memref<11x26x60xf32, #tpu.memory_space<vmem>>, vector<1x26x60xf32>
    %3 = vector.shape_cast %2 : vector<1x26x60xf32> to vector<26x60xf32>
    %cst = arith.constant dense<0.000000e+00> : vector<26x4xf32>
    %4 = tpu.matmul %3, %1, %cst {dimension_numbers = #tpu.dot_dimension_numbers<[1], [0], [0], [1], [0, 0, 1, 1], [], []>} : vector<26x60xf32>, vector<60x4xf32>, vector<26x4xf32> -> vector<26x4xf32>
    %c1 = arith.constant 1 : index
    %c0_6 = arith.constant 0 : index
    %c0_7 = arith.constant 0 : index
    %5 = vector.load %arg1[%c1, %c0_6, %c0_7] : memref<11x26x60xf32, #tpu.memory_space<vmem>>, vector<1x26x60xf32>
    %6 = vector.shape_cast %5 : vector<1x26x60xf32> to vector<26x60xf32>
    %cst_8 = arith.constant dense<0.000000e+00> : vector<26x4xf32>
    %7 = tpu.matmul %6, %1, %cst_8 {dimension_numbers = #tpu.dot_dimension_numbers<[1], [0], [0], [1], [0, 0, 1, 1], [], []>} : vector<26x60xf32>, vector<60x4xf32>, vector<26x4xf32> -> vector<26x4xf32>
    %c2 = arith.constant 2 : index
    %c0_9 = arith.constant 0 : index
    %c0_10 = arith.constant 0 : index
    %8 = vector.load %arg1[%c2, %c0_9, %c0_10] : memref<11x26x60xf32, #tpu.memory_space<vmem>>, vector<1x26x60xf32>
    %9 = vector.shape_cast %8 : vector<1x26x60xf32> to vector<26x60xf32>
    %cst_11 = arith.constant dense<0.000000e+00> : vector<26x4xf32>
    %10 = tpu.matmul %9, %1, %cst_11 {dimension_numbers = #tpu.dot_dimension_numbers<[1], [0], [0], [1], [0, 0, 1, 1], [], []>} : vector<26x60xf32>, vector<60x4xf32>, vector<26x4xf32> -> vector<26x4xf32>
    %c0_12 = arith.constant 0 : index
    %c0_13 = arith.constant 0 : index
    %c0_14 = arith.constant 0 : index
    %11 = vector.load %arg2[%c0_12, %c0_13, %c0_14] : memref<3x4x256xf32, #tpu.memory_space<vmem>>, vector<1x4x256xf32>
    %12 = vector.shape_cast %11 : vector<1x4x256xf32> to vector<4x256xf32>
    %cst_15 = arith.constant dense<0.000000e+00> : vector<26x256xf32>
    %13 = tpu.matmul %4, %12, %cst_15 {dimension_numbers = #tpu.dot_dimension_numbers<[1], [0], [0], [1], [0, 0, 1, 1], [], []>} : vector<26x4xf32>, vector<4x256xf32>, vector<26x256xf32> -> vector<26x256xf32>
    %c1_16 = arith.constant 1 : index
    %c0_17 = arith.constant 0 : index
    %c0_18 = arith.constant 0 : index
    %14 = vector.load %arg2[%c1_16, %c0_17, %c0_18] : memref<3x4x256xf32, #tpu.memory_space<vmem>>, vector<1x4x256xf32>
    %15 = vector.shape_cast %14 : vector<1x4x256xf32> to vector<4x256xf32>
    %cst_19 = arith.constant dense<0.000000e+00> : vector<26x256xf32>
    %16 = tpu.matmul %7, %15, %cst_19 {dimension_numbers = #tpu.dot_dimension_numbers<[1], [0], [0], [1], [0, 0, 1, 1], [], []>} : vector<26x4xf32>, vector<4x256xf32>, vector<26x256xf32> -> vector<26x256xf32>
    %17 = arith.addf %13, %16 : vector<26x256xf32>
    %c2_20 = arith.constant 2 : index
    %c0_21 = arith.constant 0 : index
    %c0_22 = arith.constant 0 : index
    %18 = vector.load %arg2[%c2_20, %c0_21, %c0_22] : memref<3x4x256xf32, #tpu.memory_space<vmem>>, vector<1x4x256xf32>
    %19 = vector.shape_cast %18 : vector<1x4x256xf32> to vector<4x256xf32>
    %cst_23 = arith.constant dense<0.000000e+00> : vector<26x256xf32>
    %20 = tpu.matmul %10, %19, %cst_23 {dimension_numbers = #tpu.dot_dimension_numbers<[1], [0], [0], [1], [0, 0, 1, 1], [], []>} : vector<26x4xf32>, vector<4x256xf32>, vector<26x256xf32> -> vector<26x256xf32>
    %21 = arith.addf %17, %20 : vector<26x256xf32>
    %22 = vector.extract_strided_slice %0 {offsets = [0, 0], sizes = [1, 256], strides = [1, 1]} : vector<5x256xf32> to vector<1x256xf32>
    %23 = vector.broadcast %22 : vector<1x256xf32> to vector<26x256xf32>
    %24 = arith.addf %21, %23 : vector<26x256xf32>
    %cst_24 = arith.constant 0.000000e+00 : f32
    %25 = vector.broadcast %cst_24 : f32 to vector<26x256xf32>
    %26 = arith.maximumf %24, %25 : vector<26x256xf32>
    %c3 = arith.constant 3 : index
    %c0_25 = arith.constant 0 : index
    %c0_26 = arith.constant 0 : index
    %27 = vector.load %arg1[%c3, %c0_25, %c0_26] : memref<11x26x60xf32, #tpu.memory_space<vmem>>, vector<1x10x26xf32>
    %28 = vector.shape_cast %27 : vector<1x10x26xf32> to vector<10x26xf32>
    %cst_27 = arith.constant dense<0.000000e+00> : vector<10x256xf32>
    %29 = tpu.matmul %28, %26, %cst_27 {dimension_numbers = #tpu.dot_dimension_numbers<[1], [0], [0], [1], [0, 0, 1, 1], [], []>} : vector<10x26xf32>, vector<26x256xf32>, vector<10x256xf32> -> vector<10x256xf32>
    %c4 = arith.constant 4 : index
    %c0_28 = arith.constant 0 : index
    %c0_29 = arith.constant 0 : index
    %30 = vector.load %arg1[%c4, %c0_28, %c0_29] : memref<11x26x60xf32, #tpu.memory_space<vmem>>, vector<1x10x26xf32>
    %31 = vector.shape_cast %30 : vector<1x10x26xf32> to vector<10x26xf32>
    %cst_30 = arith.constant dense<0.000000e+00> : vector<10x256xf32>
    %32 = tpu.matmul %31, %26, %cst_30 {dimension_numbers = #tpu.dot_dimension_numbers<[1], [0], [0], [1], [0, 0, 1, 1], [], []>} : vector<10x26xf32>, vector<26x256xf32>, vector<10x256xf32> -> vector<10x256xf32>
    %c5 = arith.constant 5 : index
    %c0_31 = arith.constant 0 : index
    %c0_32 = arith.constant 0 : index
    %33 = vector.load %arg1[%c5, %c0_31, %c0_32] : memref<11x26x60xf32, #tpu.memory_space<vmem>>, vector<1x10x26xf32>
    %34 = vector.shape_cast %33 : vector<1x10x26xf32> to vector<10x26xf32>
    %cst_33 = arith.constant dense<0.000000e+00> : vector<10x256xf32>
    %35 = tpu.matmul %34, %26, %cst_33 {dimension_numbers = #tpu.dot_dimension_numbers<[1], [0], [0], [1], [0, 0, 1, 1], [], []>} : vector<10x26xf32>, vector<26x256xf32>, vector<10x256xf32> -> vector<10x256xf32>
    %36 = tpu.concatenate %29, %32, %35 in 1 : vector<10x256xf32>, vector<10x256xf32>, vector<10x256xf32> -> vector<10x768xf32>
    %c0_34 = arith.constant 0 : index
    %c0_35 = arith.constant 0 : index
    %c0_36 = arith.constant 0 : index
    %37 = vector.load %arg3[%c0_34, %c0_35, %c0_36] : memref<2x768x256xf32, #tpu.memory_space<vmem>>, vector<1x768x256xf32>
    %38 = vector.shape_cast %37 : vector<1x768x256xf32> to vector<768x256xf32>
    %cst_37 = arith.constant dense<0.000000e+00> : vector<10x256xf32>
    %39 = tpu.matmul %36, %38, %cst_37 {dimension_numbers = #tpu.dot_dimension_numbers<[1], [0], [0], [1], [0, 0, 1, 1], [], []>} : vector<10x768xf32>, vector<768x256xf32>, vector<10x256xf32> -> vector<10x256xf32>
    %40 = vector.extract_strided_slice %0 {offsets = [1, 0], sizes = [1, 256], strides = [1, 1]} : vector<5x256xf32> to vector<1x256xf32>
    %41 = vector.broadcast %40 : vector<1x256xf32> to vector<10x256xf32>
    %42 = arith.addf %39, %41 : vector<10x256xf32>
    %cst_38 = arith.constant 0.000000e+00 : f32
    %43 = vector.broadcast %cst_38 : f32 to vector<10x256xf32>
    %44 = arith.maximumf %42, %43 : vector<10x256xf32>
    %c6 = arith.constant 6 : index
    %c0_39 = arith.constant 0 : index
    %c0_40 = arith.constant 0 : index
    %45 = vector.load %arg1[%c6, %c0_39, %c0_40] : memref<11x26x60xf32, #tpu.memory_space<vmem>>, vector<1x4x10xf32>
    %46 = vector.shape_cast %45 : vector<1x4x10xf32> to vector<4x10xf32>
    %cst_41 = arith.constant dense<0.000000e+00> : vector<4x256xf32>
    %47 = tpu.matmul %46, %44, %cst_41 {dimension_numbers = #tpu.dot_dimension_numbers<[1], [0], [0], [1], [0, 0, 1, 1], [], []>} : vector<4x10xf32>, vector<10x256xf32>, vector<4x256xf32> -> vector<4x256xf32>
    %c7 = arith.constant 7 : index
    %c0_42 = arith.constant 0 : index
    %c0_43 = arith.constant 0 : index
    %48 = vector.load %arg1[%c7, %c0_42, %c0_43] : memref<11x26x60xf32, #tpu.memory_space<vmem>>, vector<1x4x10xf32>
    %49 = vector.shape_cast %48 : vector<1x4x10xf32> to vector<4x10xf32>
    %cst_44 = arith.constant dense<0.000000e+00> : vector<4x256xf32>
    %50 = tpu.matmul %49, %44, %cst_44 {dimension_numbers = #tpu.dot_dimension_numbers<[1], [0], [0], [1], [0, 0, 1, 1], [], []>} : vector<4x10xf32>, vector<10x256xf32>, vector<4x256xf32> -> vector<4x256xf32>
    %c8 = arith.constant 8 : index
    %c0_45 = arith.constant 0 : index
    %c0_46 = arith.constant 0 : index
    %51 = vector.load %arg1[%c8, %c0_45, %c0_46] : memref<11x26x60xf32, #tpu.memory_space<vmem>>, vector<1x4x10xf32>
    %52 = vector.shape_cast %51 : vector<1x4x10xf32> to vector<4x10xf32>
    %cst_47 = arith.constant dense<0.000000e+00> : vector<4x256xf32>
    %53 = tpu.matmul %52, %44, %cst_47 {dimension_numbers = #tpu.dot_dimension_numbers<[1], [0], [0], [1], [0, 0, 1, 1], [], []>} : vector<4x10xf32>, vector<10x256xf32>, vector<4x256xf32> -> vector<4x256xf32>
    %54 = tpu.concatenate %47, %50, %53 in 1 : vector<4x256xf32>, vector<4x256xf32>, vector<4x256xf32> -> vector<4x768xf32>
    %c1_48 = arith.constant 1 : index
    %c0_49 = arith.constant 0 : index
    %c0_50 = arith.constant 0 : index
    %55 = vector.load %arg3[%c1_48, %c0_49, %c0_50] : memref<2x768x256xf32, #tpu.memory_space<vmem>>, vector<1x768x256xf32>
    %56 = vector.shape_cast %55 : vector<1x768x256xf32> to vector<768x256xf32>
    %cst_51 = arith.constant dense<0.000000e+00> : vector<4x256xf32>
    %57 = tpu.matmul %54, %56, %cst_51 {dimension_numbers = #tpu.dot_dimension_numbers<[1], [0], [0], [1], [0, 0, 1, 1], [], []>} : vector<4x768xf32>, vector<768x256xf32>, vector<4x256xf32> -> vector<4x256xf32>
    %58 = vector.extract_strided_slice %0 {offsets = [2, 0], sizes = [1, 256], strides = [1, 1]} : vector<5x256xf32> to vector<1x256xf32>
    %59 = vector.broadcast %58 : vector<1x256xf32> to vector<4x256xf32>
    %60 = arith.addf %57, %59 : vector<4x256xf32>
    %cst_52 = arith.constant 0.000000e+00 : f32
    %61 = vector.broadcast %cst_52 : f32 to vector<4x256xf32>
    %62 = arith.maximumf %60, %61 : vector<4x256xf32>
    %c9 = arith.constant 9 : index
    %c0_53 = arith.constant 0 : index
    %c0_54 = arith.constant 0 : index
    %63 = vector.load %arg1[%c9, %c0_53, %c0_54] : memref<11x26x60xf32, #tpu.memory_space<vmem>>, vector<1x2x4xf32>
    %64 = vector.shape_cast %63 : vector<1x2x4xf32> to vector<2x4xf32>
    %cst_55 = arith.constant dense<0.000000e+00> : vector<2x256xf32>
    %65 = tpu.matmul %64, %62, %cst_55 {dimension_numbers = #tpu.dot_dimension_numbers<[1], [0], [0], [1], [0, 0, 1, 1], [], []>} : vector<2x4xf32>, vector<4x256xf32>, vector<2x256xf32> -> vector<2x256xf32>
    %c10 = arith.constant 10 : index
    %c0_56 = arith.constant 0 : index
    %c0_57 = arith.constant 0 : index
    %66 = vector.load %arg1[%c10, %c0_56, %c0_57] : memref<11x26x60xf32, #tpu.memory_space<vmem>>, vector<1x2x4xf32>
    %67 = vector.shape_cast %66 : vector<1x2x4xf32> to vector<2x4xf32>
    %cst_58 = arith.constant dense<0.000000e+00> : vector<2x256xf32>
    %68 = tpu.matmul %67, %62, %cst_58 {dimension_numbers = #tpu.dot_dimension_numbers<[1], [0], [0], [1], [0, 0, 1, 1], [], []>} : vector<2x4xf32>, vector<4x256xf32>, vector<2x256xf32> -> vector<2x256xf32>
    %69 = tpu.concatenate %65, %68 in 1 : vector<2x256xf32>, vector<2x256xf32> -> vector<2x512xf32>
    %c0_59 = arith.constant 0 : index
    %c0_60 = arith.constant 0 : index
    %70 = vector.load %arg4[%c0_59, %c0_60] : memref<640x128xf32, #tpu.memory_space<vmem>>, vector<512x128xf32>
    %cst_61 = arith.constant dense<0.000000e+00> : vector<2x128xf32>
    %71 = tpu.matmul %69, %70, %cst_61 {dimension_numbers = #tpu.dot_dimension_numbers<[1], [0], [0], [1], [0, 0, 1, 1], [], []>} : vector<2x512xf32>, vector<512x128xf32>, vector<2x128xf32> -> vector<2x128xf32>
    %72 = vector.extract_strided_slice %0 {offsets = [3, 0], sizes = [1, 128], strides = [1, 1]} : vector<5x256xf32> to vector<1x128xf32>
    %73 = vector.broadcast %72 : vector<1x128xf32> to vector<2x128xf32>
    %74 = arith.addf %71, %73 : vector<2x128xf32>
    %cst_62 = arith.constant 0.000000e+00 : f32
    %75 = vector.broadcast %cst_62 : f32 to vector<2x128xf32>
    %76 = arith.maximumf %74, %75 : vector<2x128xf32>
    %c512 = arith.constant 512 : index
    %c0_63 = arith.constant 0 : index
    %77 = vector.load %arg4[%c512, %c0_63] : memref<640x128xf32, #tpu.memory_space<vmem>>, vector<128x128xf32>
    %cst_64 = arith.constant dense<0.000000e+00> : vector<2x128xf32>
    %78 = tpu.matmul %76, %77, %cst_64 {dimension_numbers = #tpu.dot_dimension_numbers<[1], [0], [0], [1], [0, 0, 1, 1], [], []>} : vector<2x128xf32>, vector<128x128xf32>, vector<2x128xf32> -> vector<2x128xf32>
    %79 = vector.extract_strided_slice %0 {offsets = [4, 0], sizes = [1, 128], strides = [1, 1]} : vector<5x256xf32> to vector<1x128xf32>
    %80 = vector.broadcast %79 : vector<1x128xf32> to vector<2x128xf32>
    %81 = arith.addf %78, %80 : vector<2x128xf32>
    %82 = vector.extract_strided_slice %81 {offsets = [0, 0], sizes = [2, 10], strides = [1, 1]} : vector<2x128xf32> to vector<2x10xf32>
    %c0_65 = arith.constant 0 : index
    %c0_66 = arith.constant 0 : index
    %83 = vector.load %arg6[%c0_65, %c0_66] : memref<2x10xf32, #tpu.memory_space<vmem>>, vector<2x10xf32>
    tpu.vector_store %arg6[%c0_65, %c0_66], %82 {strides = array<i32>} : memref<2x10xf32, #tpu.memory_space<vmem>>, vector<2x10xf32>,
    return
  }
}

</mosaic_0001>

<bundles_post_ra>
// kernel: softmax_1d_forward.1
= control target key start
LH: loop header
LB: loop body
LE: loop exit
PB: predicated region body
PF: predicated region fallthrough
CT: control target
= control target key end

     0   :  { %11 = vsyncpa [#allocation3], 0  ;;  %s2552_s0 = inlined_call_operand.vmem [shape: f32[60,4], index: 0, kind: input, shape index: {}]   ;;  %s2553_s1 = inlined_call_operand.hbm [shape: f32[11,26,60], index: 1, kind: input, shape index: {}]   ;;  %s2554_s2 = inlined_call_operand.hbm [shape: f32[3,4,256], index: 2, kind: input, shape index: {}]   ;;  %s2555_s3 = inlined_call_operand.hbm [shape: f32[2,768,256], index: 3, kind: input, shape index: {}]   ;;  %s2556_s4 = inlined_call_operand.hbm [shape: f32[640,128], index: 4, kind: input, shape index: {}]   ;;  %s2557_s5 = inlined_call_operand.hbm [shape: f32[5,256], index: 5, kind: input, shape index: {}]   ;;  %s2558_s6 = inlined_call_operand.hbm [shape: f32[2,10], index: 6, kind: output, shape index: {}]  }
   0x1   :  { %12 = vsyncpa [#allocation6], 0 }
   0x2   :  { %13 = vsyncpa [#allocation9], 0 }
   0x3   :  { %14 = vsyncpa [#allocation4], 0  ;;  %s34_s23 = sshll.u32 %s2554_s2, 4  ;;  %s2308_s24 = smov [#allocation5]   ;;  %s35_s23 = int_to_ptr.hbm [resolvable:$true] %s34_s23 }
   0x4   :  { %s36_s25 = sshll.u32 %s2308_s24, 4  ;;  %s60_s28 = sshll.u32 %s2556_s4, 4  ;;  %s37_s25 = int_to_ptr.vmem [resolvable:$true] %s36_s25  ;;  %s61_s28 = int_to_ptr.hbm [resolvable:$true] %s60_s28 }
   0x5   :  { %s2309_s29 = smov 128   ;;  %s2310_s30 = smov 8  }
   0x6   :  { %42 = dma.hbm_to_vmem [thread:$0]  %s35_s23, 384, %s37_s25, [#allocation6], %s2309_s29, %s2309_s29, %s2310_s30  }
   0x7   :  { %s2311_s7 = smov [#allocation8]   ;;  %s21_s11 = sshll.u32 %s2553_s1, 4  ;;  %s22_s11 = int_to_ptr.hbm [resolvable:$true] %s21_s11 }
   0x8   :  { %s62_s8 = sshll.u32 %s2311_s7, 4  ;;  %s47_s13 = sshll.u32 %s2555_s3, 4  ;;  %s63_s8 = int_to_ptr.vmem [resolvable:$true] %s62_s8  ;;  %s48_s13 = int_to_ptr.hbm [resolvable:$true] %s47_s13 }
   0x9   :  { %68 = dma.hbm_to_vmem [thread:$0]  %s61_s28, 10240, %s63_s8, [#allocation9], %s2309_s29, %s2309_s29, %s2310_s30  }
   0xa   :  { %s2312_s14 = smov [#allocation2]   ;;  %s2313_s4 = smov [#allocation7]  }
   0xb   :  { %s23_s15 = sshll.u32 %s2312_s14, 4  ;;  %s49_s16 = sshll.u32 %s2313_s4, 4  ;;  %s24_s15 = int_to_ptr.vmem [resolvable:$true] %s23_s15  ;;  %s50_s16 = int_to_ptr.vmem [resolvable:$true] %s49_s16 }
   0xc   :  { %29 = dma.hbm_to_vmem [thread:$0]  %s22_s11, 5632, %s24_s15, [#allocation3], %s2309_s29, %s2309_s29, %s2310_s30  }
   0xd   :  { %s2314_s17 = smov 256   ;;  %s2315_s18 = smov 16  }
   0xe   :  { %55 = dma.hbm_to_vmem [thread:$0]  %s48_s13, 49152, %s50_s16, [#allocation6], %s2314_s17, %s2314_s17, %s2315_s18  }
   0xf   :  { %s74_s20 = sshll.u32 %s2557_s5, 4  ;;  %s2316_s21 = smov [#allocation10]   ;;  %s75_s20 = int_to_ptr.hbm [resolvable:$true] %s74_s20 }
  0x10   :  { %s76_s22 = sshll.u32 %s2316_s21, 4  ;;  %s77_s22 = int_to_ptr.vmem [resolvable:$true] %s76_s22 }
  0x11   :  { %79 = dma.hbm_to_vmem [thread:$0]  %s75_s20, 256, %s77_s22, [#allocation9]  }
  0x12   :  { %2300 = dma.done.wait [#allocation3], 5632  }
  0x13   :  { %2301 = vsyncadd [#allocation3], 4294961664 }
  0x14   :  { %2302 = dma.done.wait [#allocation6], 49536  }
  0x15   :  { %2303 = vsyncadd [#allocation6], 4294917760 }
  0x16   :  { %2304 = dma.done.wait [#allocation9], 10496  }
  0x17   :  { %2305 = vsyncadd [#allocation9], 4294956800  ;;  %vm127_vm0 = vcmask 1043456   ;;  %v109_v0 = vld [vmem:[%s2552_s0 + $0x38] sm:$0xf]  ;;  %v108_v1 = vld [vmem:[%s2552_s0 + $0x30] sm:$0xff] }
  0x18   :  { %2049 = vmatpush.msk.msra.mxu1 %vm127_vm0, %v109_v0  ;;  %2127 = vmatpush.msk.msra.mxu2 %vm127_vm0, %v109_v0  ;;  %v107_v2 = vld [vmem:[%s2552_s0 + $0x28] sm:$0xff]  ;;  %v106_v3 = vld [vmem:[%s2552_s0 + $0x20] sm:$0xff]  ;;  %v105_v4 = vld [vmem:[%s2552_s0 + $0x18] sm:$0xff]  ;;  %vm114_vm1 = vcmask 490496   ;;  %vm259_vm2 = vcmask 31744   ;;  %vm528_vm3 = vcmask 1041408  }
  0x19   :  { %2044 = vmatpush.msk.msra.mxu0 %vm127_vm0, %v109_v0  ;;  %v104_v5 = vld [vmem:[%s2552_s0 + $0x10] sm:$0xff]  ;;  %v103_v6 = vld [vmem:[%s2552_s0 + $0x8] sm:$0xff]  ;;  %v102_v7 = vld [vmem:[%s2552_s0] sm:$0xff]  ;;  %vm521_vm4 = vcmask 211968   ;;  %vm1167_vm5 = vcmask 80896   ;;  %s2317_s0 = smov [#allocation11]  }
  0x1a   :  { %186 = vmatpush.msra.mxu1 %v108_v1  ;;  %2128 = vmatpush.msra.mxu2 %v108_v1  ;;  %v161_v8 = vld [vmem:[#allocation2 + $0x20] sm:$0xff]  ;;  %v163_v9 = vld [vmem:[#allocation2 + $0x30] sm:$0xff]  ;;  %v162_v11 = vld [vmem:[#allocation2 + $0x28] sm:$0xff]  ;;  %s2030_s12 = sshll.u32 %s2317_s0, 4  ;;  %s2032_s15 = sshll.u32 %s2558_s6, 4  ;;  %vm2023_vm6 = vcmask 74752   ;;  %s2031_s12 = int_to_ptr.vmem [resolvable:$true] %s2030_s12  ;;  %s2033_s15 = int_to_ptr.hbm [resolvable:$true] %s2032_s15 }
  0x1b   :  { %140 = vmatpush.msra.mxu0 %v108_v1  ;;  %v110_v10 = vld [vmem:[#allocation2] sm:$0xff]  ;;  %v164_v12 = vld [vmem:[#allocation2 + $0x38] sm:$0x3]  ;;  %v111_v13 = vld [vmem:[#allocation2 + $0x8] sm:$0xff] }
  0x1c   :  { %187 = vmatpush.msra.mxu1 %v107_v2  ;;  %2129 = vmatpush.msra.mxu2 %v107_v2  ;;  %v207_v14 = vld [vmem:[#allocation2 + $0x40] sm:$0xff]  ;;  %v208_v15 = vld [vmem:[#allocation2 + $0x48] sm:$0xff]  ;;  %v112_v16 = vld [vmem:[#allocation2 + $0x10] sm:$0xff] }
  0x1d   :  { %141 = vmatpush.msra.mxu0 %v107_v2  ;;  %v209_v17 = vld [vmem:[#allocation2 + $0x50] sm:$0xff]  ;;  %v113_v18 = vld [vmem:[#allocation2 + $0x18] sm:$0x3]  ;;  %v254_v20 = vld [vmem:[#allocation5 + $0x8] sm:$0xff] }
  0x1e   :  { %188 = vmatpush.msra.mxu1 %v106_v3  ;;  %2130 = vmatpush.msra.mxu2 %v106_v3  ;;  %v210_v19 = vld [vmem:[#allocation2 + $0x58] sm:$0x3]  ;;  %256 = vst [vmem:[#allocation1] ss:$2 sm:$0xff] %v254_v20  ;;  %v252_v21 = vld [vmem:[#allocation5] sm:$0xff]  ;;  %v413_v24 = vld [vmem:[#allocation5 + $0x10] sm:$0xff] }
  0x1f   :  { %142 = vmatpush.msra.mxu0 %v106_v3  ;;  %v100_v54 = vld [vmem:[#allocation10] sm:$0x1f] }
  0x20   :  { %189 = vmatpush.msra.mxu1 %v105_v4  ;;  %2131 = vmatpush.msra.mxu2 %v105_v4  ;;  %v500_v61 = vperm.slane %v100_v54, 0  ;;  %v785_v54 = vld [vmem:[#allocation7 + $0x2f0] sm:$0xff] }
  0x21   :  { %143 = vmatpush.msra.mxu0 %v105_v4 }
  0x22   :  { %190 = vmatpush.msra.mxu1 %v104_v5  ;;  %2132 = vmatpush.msra.mxu2 %v104_v5 }
  0x23   :  { %144 = vmatpush.msra.mxu0 %v104_v5 }
  0x24   :  { %191 = vmatpush.msra.mxu1 %v103_v6  ;;  %2133 = vmatpush.msra.mxu2 %v103_v6 }
  0x25   :  { %145 = vmatpush.msra.mxu0 %v103_v6  ;;  %v257_v22 = vld.sshfl [vmem:[#allocation1] sm:$0xff pattern:$0x75316420]  ;;  %v258_v23 = vld.sshfl [vmem:[#allocation1 + $0x8] sm:$0xff pattern:$0x75316420] }
  0x26   :  { %192 = vmatpush.msra.mxu1 %v102_v7  ;;  %2134 = vmatpush.msra.mxu2 %v102_v7  ;;  %335 = vst [vmem:[#allocation1] ss:$2 sm:$0xff] %v252_v21 }
  0x27   :  { %2050 = vmatmul.msk.f32.vlgmr.msra.gmra.mxu1 %vm114_vm1, %v161_v8  ;;  %2052 = vmatmul.msk.f32.vlgmr.msra.gmra.mxu2 %vm114_vm1, %v163_v9 }
  0x28   :  { %2054 = vmatpush.msk.msrb.mxu1 %vm127_vm0, %v109_v0  ;;  %2135 = vmatpush.msk.msrb.mxu2 %vm127_vm0, %v109_v0 }
  0x29   :  { %146 = vmatpush.msra.mxu0 %v102_v7  ;;  %2059 = vmatpush.msk.msra.mxu3 %vm127_vm0, %v257_v22 }
  0x2a   :  { %232 = vmatpush.msrb.mxu1 %v108_v1  ;;  %2136 = vmatpush.msrb.mxu2 %v108_v1 }
  0x2b   :  { %2045 = vmatmul.msk.f32.vlgmr.msra.gmra.mxu0 %vm114_vm1, %v110_v10  ;;  %2064 = vmatpush.msk.msrb.mxu3 %vm127_vm0, %v258_v23  ;;  %v582_v10 = vld [vmem:[#allocation2 + $0x80] sm:$0xff] }
  0x2c   :  { %233 = vmatpush.msrb.mxu1 %v107_v2  ;;  %2137 = vmatpush.msrb.mxu2 %v107_v2  ;;  %v2467_v23 = vld [vmem:[#allocation10 + $0x8] sm:$0x1f] }
  0x2d   :  { %v336_v25 = vld.sshfl [vmem:[#allocation1] sm:$0xff pattern:$0x75316420]  ;;  %v337_v26 = vld.sshfl [vmem:[#allocation1 + $0x8] sm:$0xff pattern:$0x75316420] }
  0x2e   :  { %234 = vmatpush.msrb.mxu1 %v106_v3  ;;  %2138 = vmatpush.msrb.mxu2 %v106_v3  ;;  %415 = vst [vmem:[#allocation1] ss:$2 sm:$0xff] %v413_v24 }
  0x2f   :  { %2051 = vmatmul.msk.f32.gmra.mxu1 %vm114_vm1, %v162_v11  ;;  %2053 = vmatmul.msk.f32.gmra.mxu2 %vm114_vm1, %v164_v12  ;;  %v519_v11 = vld [vmem:[#allocation2 + $0x60] sm:$0xff] }
  0x30   :  { %235 = vmatpush.msrb.mxu1 %v105_v4  ;;  %2139 = vmatpush.msrb.mxu2 %v105_v4 }
  0x31   :  { %2069 = vmatpush.msk.msrb.mxu0 %vm127_vm0, %v336_v25 }
  0x32   :  { %236 = vmatpush.msrb.mxu1 %v104_v5  ;;  %2140 = vmatpush.msrb.mxu2 %v104_v5 }
  0x33   :  { %2046 = vmatmul.msk.f32.gmra.mxu0 %vm114_vm1, %v111_v13 }
  0x34   :  { %237 = vmatpush.msrb.mxu1 %v103_v6  ;;  %2141 = vmatpush.msrb.mxu2 %v103_v6 }
  0x35   :  { %v416_v27 = vld.sshfl [vmem:[#allocation1] sm:$0xff pattern:$0x75316420]  ;;  %v417_v37 = vld.sshfl [vmem:[#allocation1 + $0x8] sm:$0xff pattern:$0x75316420] }
  0x36   :  { %238 = vmatpush.msrb.mxu1 %v102_v7  ;;  %2142 = vmatpush.msrb.mxu2 %v102_v7 }
  0x37   :  { %2055 = vmatmul.msk.f32.vlgmr.msrb.gmra.mxu1 %vm114_vm1, %v207_v14  ;;  %2056 = vmatmul.msk.f32.vlgmr.msrb.gmra.mxu2 %vm114_vm1, %v208_v15  ;;  %v2459_v14 = vld [vmem:[#allocation2 + $0x88] sm:$0x3] }
  0x38   :  { %2074 = vmatpush.msk.msra.mxu1 %vm127_vm0, %v337_v26  ;;  %2079 = vmatpush.msk.msra.mxu2 %vm127_vm0, %v416_v27  ;;  %v2461_v15 = vld [vmem:[#allocation2 + $0x68] sm:$0x3] }
  0x3b   :  { %2047 = vmatmul.msk.f32.gmra.mxu0 %vm114_vm1, %v112_v16 }
  0x3f   :  { %2057 = vmatmul.msk.f32.gmra.mxu2 %vm114_vm1, %v209_v17 }
  0x43   :  { %2048 = vmatmul.msk.f32.gmra.mxu0 %vm114_vm1, %v113_v18 }
  0x47   :  { %2058 = vmatmul.msk.f32.gmra.mxu2 %vm114_vm1, %v210_v19 }
  0xa4   :  { %v194_v28 = vpop.f32.mrf.mxu1 }
  0xa5   :  { %2060 = vmatmul.msk.f32.vlgmr.msra.gmra.mxu3 %vm259_vm2, %v194_v28 }
  0xa6   :  { %2084 = vmatpush.msk.msra.mxu3 %vm127_vm0, %v417_v37  ;;  %v721_v37 = vld [vmem:[#allocation7 + $0xf0] sm:$0xff] }
  0xa8   :  { %v148_v29 = vpop.f32.mrf.mxu0 }
  0xa9   :  { %2070 = vmatmul.msk.f32.vlgmr.msrb.gmra.mxu0 %vm259_vm2, %v148_v29  ;;  %2075 = vmatmul.msk.f32.vlgmr.msra.gmra.mxu1 %vm259_vm2, %v148_v29  ;;  %v501_v29 = vperm.slane %v2467_v23, 0 }
  0xaa   :  { %v200_v30 = vpop.f32.mrf.mxu2 }
  0xac   :  { %v197_v31 = vpop.f32.mrf.mxu1 }
  0xad   :  { %2061 = vmatmul.msk.f32.gmra.mxu3 %vm259_vm2, %v197_v31 }
  0xb0   :  { %v151_v32 = vpop.f32.mrf.mxu0 }
  0xb1   :  { %2071 = vmatmul.msk.f32.gmra.mxu0 %vm259_vm2, %v151_v32  ;;  %2076 = vmatmul.msk.f32.gmra.mxu1 %vm259_vm2, %v151_v32 }
  0xb2   :  { %v203_v33 = vpop.f32.mrf.mxu2 }
  0xb4   :  { %v240_v34 = vpop.f32.mrf.mxu1 }
  0xb5   :  { %2062 = vmatmul.msk.f32.gmra.mxu3 %vm259_vm2, %v200_v30  ;;  %2080 = vmatmul.msk.f32.vlgmr.msra.gmra.mxu2 %vm259_vm2, %v240_v34 }
  0xb8   :  { %v154_v35 = vpop.f32.mrf.mxu0 }
  0xb9   :  { %2072 = vmatmul.msk.f32.gmra.mxu0 %vm259_vm2, %v154_v35  ;;  %2077 = vmatmul.msk.f32.gmra.mxu1 %vm259_vm2, %v154_v35 }
  0xba   :  { %v243_v36 = vpop.f32.mrf.mxu2 }
  0xbd   :  { %2063 = vmatmul.msk.f32.gmra.mxu3 %vm259_vm2, %v203_v33  ;;  %2081 = vmatmul.msk.f32.gmra.mxu2 %vm259_vm2, %v243_v36 }
  0xc0   :  { %v157_v38 = vpop.f32.mrf.mxu0 }
  0xc1   :  { %2073 = vmatmul.msk.f32.gmra.mxu0 %vm259_vm2, %v157_v38  ;;  %2078 = vmatmul.msk.f32.gmra.mxu1 %vm259_vm2, %v157_v38 }
  0xc2   :  { %v246_v39 = vpop.f32.mrf.mxu2 }
  0xc5   :  { %2065 = vmatmul.msk.f32.vlgmr.msrb.gmra.mxu3 %vm259_vm2, %v194_v28  ;;  %2082 = vmatmul.msk.f32.gmra.mxu2 %vm259_vm2, %v246_v39 }
  0xc6   :  { %885 = vmatpush.msrb.mxu3 %v721_v37  ;;  %v793_v37 = vld [vmem:[#allocation7 + $0x330] sm:$0xff] }
  0xca   :  { %v249_v40 = vpop.f32.mrf.mxu2 }
  0xcd   :  { %2066 = vmatmul.msk.f32.gmra.mxu3 %vm259_vm2, %v197_v31  ;;  %2083 = vmatmul.msk.f32.gmra.mxu2 %vm259_vm2, %v249_v40 }
  0xd5   :  { %2067 = vmatmul.msk.f32.gmra.mxu3 %vm259_vm2, %v200_v30 }
  0xdd   :  { %2068 = vmatmul.msk.f32.gmra.mxu3 %vm259_vm2, %v203_v33 }
  0xe5   :  { %2085 = vmatmul.msk.f32.vlgmr.msra.gmra.mxu3 %vm259_vm2, %v240_v34 }
  0xed   :  { %2086 = vmatmul.msk.f32.gmra.mxu3 %vm259_vm2, %v243_v36 }
  0xf5   :  { %2087 = vmatmul.msk.f32.gmra.mxu3 %vm259_vm2, %v246_v39 }
  0xfd   :  { %2088 = vmatmul.msk.f32.gmra.mxu3 %vm259_vm2, %v249_v40  ;;  %v719_v40 = vld [vmem:[#allocation7 + $0xe0] sm:$0xff] }
  0xfe   :  { %886 = vmatpush.msrb.mxu3 %v719_v40  ;;  %v759_v40 = vld [vmem:[#allocation7 + $0x220] sm:$0xff] }
 0x126   :  { %v371_v42 = vpop.f32.mrf.mxu0  ;;  %v400_v12 = vpop.f32.mrf.mxu1 }
 0x128   :  { %v293_v41 = vpop.f32.mrf.mxu3 }
 0x129   :  { %v372_v60 = vadd.f32 %v371_v42, %v293_v41  ;;  %v717_v42 = vld [vmem:[#allocation7 + $0xd0] sm:$0xff] }
 0x12a   :  { %887 = vmatpush.msrb.mxu3 %v717_v42  ;;  %v847_v42 = vld [vmem:[#allocation7 + $0x4e0] sm:$0xff] }
 0x12e   :  { %v374_v44 = vpop.f32.mrf.mxu0  ;;  %v403_v16 = vpop.f32.mrf.mxu1 }
 0x130   :  { %v296_v43 = vpop.f32.mrf.mxu3 }
 0x131   :  { %v375_v55 = vadd.f32 %v374_v44, %v296_v43  ;;  %v637_v44 = vld [vmem:[#allocation2 + $0xa0] sm:$0xff] }
 0x136   :  { %v377_v49 = vpop.f32.mrf.mxu0  ;;  %v406_v19 = vpop.f32.mrf.mxu1 }
 0x138   :  { %v299_v45 = vpop.f32.mrf.mxu3  ;;  %v451_v46 = vpop.f32.mrf.mxu2 }
 0x139   :  { %v378_v53 = vadd.f32 %v377_v49, %v299_v45  ;;  %v492_v0 = vadd.f32 %v451_v46, %v372_v60  ;;  %v753_v45 = vld [vmem:[#allocation7 + $0x1f0] sm:$0xff]  ;;  %v715_v46 = vld [vmem:[#allocation7 + $0xc0] sm:$0xff] }
 0x13a   :  { %v713_v49 = vld [vmem:[#allocation7 + $0xb0] sm:$0xff]  ;;  %888 = vmatpush.msrb.mxu3 %v715_v46 }
 0x13b   :  { %v502_v5 = vadd.f32 %v500_v61, %v492_v0  ;;  %v709_v60 = vld [vmem:[#allocation7 + $0x90] sm:$0xff]  ;;  %v707_v0 = vld [vmem:[#allocation7 + $0x80] sm:$0xff] }
 0x13c   :  { %889 = vmatpush.msrb.mxu3 %v713_v49  ;;  %v845_v46 = vld [vmem:[#allocation7 + $0x4d0] sm:$0xff]  ;;  %v787_v49 = vld [vmem:[#allocation7 + $0x300] sm:$0xff] }
 0x13d   :  { %v2451_v9 = vmax.f32 %v502_v5, 0.0  ;;  %v705_v5 = vld [vmem:[#allocation7 + $0x70] sm:$0xff] }
 0x13e   :  { %v380_v52 = vpop.f32.mrf.mxu0  ;;  %v409_v21 = vpop.f32.mrf.mxu1 }
 0x140   :  { %v302_v47 = vpop.f32.mrf.mxu3  ;;  %v454_v48 = vpop.f32.mrf.mxu2 }
 0x141   :  { %v381_v56 = vadd.f32 %v380_v52, %v302_v47  ;;  %v494_v62 = vadd.f32 %v454_v48, %v375_v55  ;;  %v751_v47 = vld [vmem:[#allocation7 + $0x1e0] sm:$0xff]  ;;  %v817_v48 = vld [vmem:[#allocation7 + $0x3f0] sm:$0xff] }
 0x142   :  { %v711_v52 = vld [vmem:[#allocation7 + $0xa0] sm:$0xff]  ;;  %v2481_v55 = vld [vmem:[#allocation2 + $0xa8] sm:$0x3] }
 0x143   :  { %v504_v3 = vadd.f32 %v500_v61, %v494_v62  ;;  %890 = vmatpush.msrb.mxu3 %v711_v52  ;;  %v811_v62 = vld [vmem:[#allocation7 + $0x3c0] sm:$0xff] }
 0x144   :  { %v875_v52 = vld [vmem:[#allocation7 + $0x5c0] sm:$0xff] }
 0x145   :  { %v2447_v8 = vmax.f32 %v504_v3, 0.0  ;;  %891 = vmatpush.msrb.mxu3 %v709_v60  ;;  %v739_v3 = vld [vmem:[#allocation7 + $0x180] sm:$0xff] }
 0x146   :  { %v871_v60 = vld [vmem:[#allocation7 + $0x5a0] sm:$0xff] }
 0x147   :  { %892 = vmatpush.msrb.mxu3 %v707_v0  ;;  %v869_v0 = vld [vmem:[#allocation7 + $0x590] sm:$0xff] }
 0x148   :  { %v322_v50 = vpop.f32.mrf.mxu3  ;;  %v457_v51 = vpop.f32.mrf.mxu2 }
 0x149   :  { %v496_v57 = vadd.f32 %v457_v51, %v378_v53  ;;  %v401_v28 = vadd.f32 %v400_v12, %v322_v50  ;;  %v749_v50 = vld [vmem:[#allocation7 + $0x1d0] sm:$0xff]  ;;  %v815_v51 = vld [vmem:[#allocation7 + $0x3e0] sm:$0xff]  ;;  %893 = vmatpush.msrb.mxu3 %v705_v5  ;;  %v746_v5 = vld [vmem:[#allocation7 + $0x1b8] sm:$0xff] }
 0x14a   :  { %v747_v53 = vld [vmem:[#allocation7 + $0x1c0] sm:$0xff]  ;;  %v773_v12 = vld [vmem:[#allocation7 + $0x290] sm:$0xff] }
 0x14b   :  { %v506_v1 = vadd.f32 %v500_v61, %v496_v57  ;;  %v783_v57 = vld [vmem:[#allocation7 + $0x2e0] sm:$0xff] }
 0x14d   :  { %v2441_v6 = vmax.f32 %v506_v1, 0.0  ;;  %v779_v1 = vld [vmem:[#allocation7 + $0x2c0] sm:$0xff] }
 0x150   :  { %v325_v58 = vpop.f32.mrf.mxu3  ;;  %v460_v59 = vpop.f32.mrf.mxu2 }
 0x151   :  { %v498_v63 = vadd.f32 %v460_v59, %v381_v56  ;;  %v404_v24 = vadd.f32 %v403_v16, %v325_v58  ;;  %v745_v56 = vld [vmem:[#allocation7 + $0x1b0] sm:$0xff]  ;;  %v743_v59 = vld [vmem:[#allocation7 + $0x1a0] sm:$0xff] }
 0x152   :  { %v813_v58 = vld [vmem:[#allocation7 + $0x3d0] sm:$0xff]  ;;  %v771_v16 = vld [vmem:[#allocation7 + $0x280] sm:$0xff] }
 0x153   :  { %v508_v2 = vadd.f32 %v500_v61, %v498_v63  ;;  %v781_v61 = vld [vmem:[#allocation7 + $0x2d0] sm:$0xff] }
 0x154   :  { %v741_v63 = vld [vmem:[#allocation7 + $0x190] sm:$0xff] }
 0x155   :  { %v2439_v4 = vmax.f32 %v508_v2, 0.0  ;;  %v809_v2 = vld [vmem:[#allocation7 + $0x3b0] sm:$0xff] }
 0x157   :  { %2089 = vmatpush.msk.msra.mxu0 %vm528_vm3, %v2439_v4  ;;  %2095 = vmatpush.msk.msrb.mxu2 %vm528_vm3, %v2439_v4 }
 0x158   :  { %v328_v7 = vpop.f32.mrf.mxu3 }
 0x159   :  { %548 = vmatpush.msra.mxu0 %v2441_v6  ;;  %603 = vmatpush.msrb.mxu2 %v2441_v6  ;;  %v407_v22 = vadd.f32 %v406_v19, %v328_v7  ;;  %v807_v7 = vld [vmem:[#allocation7 + $0x3a0] sm:$0xff]  ;;  %v769_v19 = vld [vmem:[#allocation7 + $0x270] sm:$0xff] }
 0x15b   :  { %549 = vmatpush.msra.mxu0 %v2447_v8  ;;  %604 = vmatpush.msrb.mxu2 %v2447_v8 }
 0x15d   :  { %550 = vmatpush.msra.mxu0 %v2451_v9  ;;  %605 = vmatpush.msrb.mxu2 %v2451_v9 }
 0x15e   :  { %2090 = vmatmul.msk.f32.vlgmr.msra.gmra.mxu0 %vm521_vm4, %v519_v11  ;;  %2096 = vmatmul.msk.f32.vlgmr.msrb.gmra.mxu2 %vm521_vm4, %v582_v10 }
 0x160   :  { %v331_v13 = vpop.f32.mrf.mxu3 }
 0x161   :  { %v410_v25 = vadd.f32 %v409_v21, %v331_v13  ;;  %v701_v13 = vld [vmem:[#allocation7 + $0x50] sm:$0xff] }
 0x162   :  { %v697_v21 = vld [vmem:[#allocation7 + $0x30] sm:$0xff] }
 0x166   :  { %2091 = vmatmul.msk.f32.gmra.mxu0 %vm521_vm4, %v2461_v15  ;;  %2097 = vmatmul.msk.f32.gmra.mxu2 %vm521_vm4, %v2459_v14 }
 0x168   :  { %v480_v17 = vpop.f32.mrf.mxu3 }
 0x169   :  { %v493_v32 = vadd.f32 %v480_v17, %v401_v28  ;;  %v699_v17 = vld [vmem:[#allocation7 + $0x40] sm:$0xff]  ;;  %v765_v28 = vld [vmem:[#allocation7 + $0x250] sm:$0xff] }
 0x16b   :  { %v503_v38 = vadd.f32 %v501_v29, %v493_v32  ;;  %v763_v32 = vld [vmem:[#allocation7 + $0x240] sm:$0xff] }
 0x16d   :  { %v511_v43 = vmax.f32 %v503_v38, 0.0  ;;  %v849_v38 = vld [vmem:[#allocation7 + $0x4f0] sm:$0xff] }
 0x170   :  { %v483_v18 = vpop.f32.mrf.mxu3 }
 0x171   :  { %v495_v30 = vadd.f32 %v483_v18, %v404_v24  ;;  %v731_v18 = vld [vmem:[#allocation7 + $0x140] sm:$0xff] }
 0x172   :  { %v767_v24 = vld [vmem:[#allocation7 + $0x260] sm:$0xff] }
 0x173   :  { %v505_v35 = vadd.f32 %v501_v29, %v495_v30  ;;  %v693_v30 = vld [vmem:[#allocation7 + $0x10] sm:$0xff] }
 0x175   :  { %v513_v41 = vmax.f32 %v505_v35, 0.0  ;;  %v723_v35 = vld [vmem:[#allocation7 + $0x100] sm:$0xff] }
 0x178   :  { %v486_v20 = vpop.f32.mrf.mxu3 }
 0x179   :  { %v497_v26 = vadd.f32 %v486_v20, %v407_v22  ;;  %v801_v20 = vld [vmem:[#allocation7 + $0x370] sm:$0xff] }
 0x17a   :  { %v729_v22 = vld [vmem:[#allocation7 + $0x130] sm:$0xff] }
 0x17b   :  { %v507_v33 = vadd.f32 %v501_v29, %v497_v26  ;;  %v695_v26 = vld [vmem:[#allocation7 + $0x20] sm:$0xff] }
 0x17d   :  { %v515_v39 = vmax.f32 %v507_v33, 0.0  ;;  %v795_v33 = vld [vmem:[#allocation7 + $0x340] sm:$0xff] }
 0x180   :  { %v489_v27 = vpop.f32.mrf.mxu3 }
 0x181   :  { %v499_v31 = vadd.f32 %v489_v27, %v410_v25  ;;  %v799_v25 = vld [vmem:[#allocation7 + $0x360] sm:$0xff] }
 0x182   :  { %v727_v27 = vld [vmem:[#allocation7 + $0x120] sm:$0xff] }
 0x183   :  { %v509_v34 = vadd.f32 %v501_v29, %v499_v31  ;;  %v797_v29 = vld [vmem:[#allocation7 + $0x350] sm:$0xff] }
 0x184   :  { %v725_v31 = vld [vmem:[#allocation7 + $0x110] sm:$0xff] }
 0x185   :  { %v517_v36 = vmax.f32 %v509_v34, 0.0  ;;  %v691_v34 = vld [vmem:[#allocation7] sm:$0xff] }
 0x187   :  { %2092 = vmatpush.msk.msrb.mxu1 %vm528_vm3, %v517_v36  ;;  %2098 = vmatpush.msk.msrb.mxu0 %vm528_vm3, %v517_v36 }
 0x188   :  { %2104 = vmatpush.msk.msra.mxu2 %vm528_vm3, %v517_v36  ;;  %v761_v36 = vld [vmem:[#allocation7 + $0x230] sm:$0xff] }
 0x189   :  { %571 = vmatpush.msrb.mxu1 %v515_v39  ;;  %626 = vmatpush.msrb.mxu0 %v515_v39 }
 0x18a   :  { %681 = vmatpush.msra.mxu2 %v515_v39  ;;  %v881_v39 = vld [vmem:[#allocation7 + $0x5f0] sm:$0xff] }
 0x18b   :  { %572 = vmatpush.msrb.mxu1 %v513_v41  ;;  %627 = vmatpush.msrb.mxu0 %v513_v41 }
 0x18c   :  { %682 = vmatpush.msra.mxu2 %v513_v41  ;;  %v791_v41 = vld [vmem:[#allocation7 + $0x320] sm:$0xff] }
 0x18d   :  { %573 = vmatpush.msrb.mxu1 %v511_v43  ;;  %628 = vmatpush.msrb.mxu0 %v511_v43 }
 0x18e   :  { %683 = vmatpush.msra.mxu2 %v511_v43  ;;  %2093 = vmatmul.msk.f32.vlgmr.msrb.gmra.mxu1 %vm521_vm4, %v519_v11  ;;  %v805_v11 = vld [vmem:[#allocation7 + $0x390] sm:$0xff]  ;;  %v879_v43 = vld [vmem:[#allocation7 + $0x5e0] sm:$0xff] }
 0x18f   :  { %2099 = vmatmul.msk.f32.vlgmr.msrb.gmra.mxu0 %vm521_vm4, %v582_v10  ;;  %2101 = vmatpush.msk.msra.mxu1 %vm528_vm3, %v2439_v4  ;;  %v777_v4 = vld [vmem:[#allocation7 + $0x2b0] sm:$0xff]  ;;  %v735_v10 = vld [vmem:[#allocation7 + $0x160] sm:$0xff] }
 0x190   :  { %2105 = vmatmul.msk.f32.vlgmr.msra.gmra.mxu2 %vm521_vm4, %v637_v44  ;;  %908 = vmatpush.msra.mxu0 %v753_v45  ;;  %v789_v45 = vld [vmem:[#allocation7 + $0x310] sm:$0xff] }
 0x191   :  { %658 = vmatpush.msra.mxu1 %v2441_v6  ;;  %954 = vmatpush.msrb.mxu2 %v817_v48  ;;  %v737_v6 = vld [vmem:[#allocation7 + $0x170] sm:$0xff]  ;;  %v755_v48 = vld [vmem:[#allocation7 + $0x200] sm:$0xff] }
 0x192   :  { %909 = vmatpush.msra.mxu0 %v751_v47  ;;  %v877_v47 = vld [vmem:[#allocation7 + $0x5d0] sm:$0xff] }
 0x193   :  { %659 = vmatpush.msra.mxu1 %v2447_v8  ;;  %955 = vmatpush.msrb.mxu2 %v815_v51  ;;  %v775_v8 = vld [vmem:[#allocation7 + $0x2a0] sm:$0xff] }
 0x194   :  { %910 = vmatpush.msra.mxu0 %v749_v50  ;;  %v722_v50 = vld [vmem:[#allocation7 + $0xf8] sm:$0xff]  ;;  %v843_v51 = vld [vmem:[#allocation7 + $0x4c0] sm:$0xff] }
 0x195   :  { %660 = vmatpush.msra.mxu1 %v2451_v9  ;;  %956 = vmatpush.msrb.mxu2 %v813_v58  ;;  %v703_v9 = vld [vmem:[#allocation7 + $0x60] sm:$0xff]  ;;  %v718_v58 = vld [vmem:[#allocation7 + $0xd8] sm:$0xff] }
 0x196   :  { %2094 = vmatmul.msk.f32.gmra.mxu1 %vm521_vm4, %v2461_v15  ;;  %911 = vmatpush.msra.mxu0 %v747_v53  ;;  %v803_v15 = vld [vmem:[#allocation7 + $0x380] sm:$0xff]  ;;  %v754_v53 = vld [vmem:[#allocation7 + $0x1f8] sm:$0xff] }
 0x197   :  { %2100 = vmatmul.msk.f32.gmra.mxu0 %vm521_vm4, %v2459_v14  ;;  %931 = vmatpush.msrb.mxu1 %v785_v54  ;;  %v733_v14 = vld [vmem:[#allocation7 + $0x150] sm:$0xff]  ;;  %v720_v54 = vld [vmem:[#allocation7 + $0xe8] sm:$0xff] }
 0x198   :  { %2106 = vmatmul.msk.f32.gmra.mxu2 %vm521_vm4, %v2481_v55  ;;  %912 = vmatpush.msra.mxu0 %v745_v56  ;;  %v873_v56 = vld [vmem:[#allocation7 + $0x5b0] sm:$0xff] }
 0x199   :  { %932 = vmatpush.msrb.mxu1 %v783_v57  ;;  %957 = vmatpush.msrb.mxu2 %v811_v62  ;;  %v752_v57 = vld [vmem:[#allocation7 + $0x1e8] sm:$0xff] }
 0x19a   :  { %913 = vmatpush.msra.mxu0 %v743_v59  ;;  %894 = vmatpush.msrb.mxu3 %v703_v9  ;;  %v839_v59 = vld [vmem:[#allocation7 + $0x4a0] sm:$0xff]  ;;  %v716_v62 = vld [vmem:[#allocation7 + $0xc8] sm:$0xff] }
 0x19b   :  { %933 = vmatpush.msrb.mxu1 %v781_v61  ;;  %958 = vmatpush.msrb.mxu2 %v809_v2  ;;  %v750_v61 = vld [vmem:[#allocation7 + $0x1d8] sm:$0xff]  ;;  %v744_v9 = vld [vmem:[#allocation7 + $0x1a8] sm:$0xff] }
 0x19c   :  { %914 = vmatpush.msra.mxu0 %v741_v63  ;;  %895 = vmatpush.msrb.mxu3 %v701_v13  ;;  %v837_v63 = vld [vmem:[#allocation7 + $0x490] sm:$0xff]  ;;  %v714_v2 = vld [vmem:[#allocation7 + $0xb8] sm:$0xff] }
 0x19d   :  { %934 = vmatpush.msrb.mxu1 %v779_v1  ;;  %959 = vmatpush.msrb.mxu2 %v807_v7  ;;  %v748_v1 = vld [vmem:[#allocation7 + $0x1c8] sm:$0xff]  ;;  %v833_v7 = vld [vmem:[#allocation7 + $0x470] sm:$0xff]  ;;  %v742_v13 = vld [vmem:[#allocation7 + $0x198] sm:$0xff] }
 0x19e   :  { %2102 = vmatmul.msk.f32.vlgmr.msra.gmra.mxu1 %vm521_vm4, %v637_v44  ;;  %915 = vmatpush.msra.mxu0 %v739_v3  ;;  %v757_v44 = vld [vmem:[#allocation7 + $0x210] sm:$0xff]  ;;  %v835_v3 = vld [vmem:[#allocation7 + $0x480] sm:$0xff] }
 0x19f   :  { %935 = vmatpush.msrb.mxu1 %v777_v4  ;;  %960 = vmatpush.msrb.mxu2 %v805_v11  ;;  %v867_v4 = vld [vmem:[#allocation7 + $0x580] sm:$0xff] }
 0x1a0   :  { %916 = vmatpush.msra.mxu0 %v737_v6  ;;  %896 = vmatpush.msrb.mxu3 %v699_v17  ;;  %v712_v6 = vld [vmem:[#allocation7 + $0xa8] sm:$0xff]  ;;  %v831_v11 = vld [vmem:[#allocation7 + $0x460] sm:$0xff] }
 0x1a1   :  { %936 = vmatpush.msrb.mxu1 %v775_v8  ;;  %961 = vmatpush.msrb.mxu2 %v803_v15  ;;  %v865_v8 = vld [vmem:[#allocation7 + $0x570] sm:$0xff]  ;;  %v740_v17 = vld [vmem:[#allocation7 + $0x188] sm:$0xff] }
 0x1a2   :  { %917 = vmatpush.msra.mxu0 %v735_v10  ;;  %897 = vmatpush.msrb.mxu3 %v697_v21  ;;  %v710_v10 = vld [vmem:[#allocation7 + $0x98] sm:$0xff]  ;;  %v829_v15 = vld [vmem:[#allocation7 + $0x450] sm:$0xff] }
 0x1a3   :  { %937 = vmatpush.msrb.mxu1 %v773_v12  ;;  %962 = vmatpush.msrb.mxu2 %v801_v20  ;;  %v863_v12 = vld [vmem:[#allocation7 + $0x560] sm:$0xff]  ;;  %v738_v21 = vld [vmem:[#allocation7 + $0x178] sm:$0xff] }
 0x1a4   :  { %918 = vmatpush.msra.mxu0 %v733_v14  ;;  %898 = vmatpush.msrb.mxu3 %v695_v26  ;;  %v708_v14 = vld [vmem:[#allocation7 + $0x88] sm:$0xff]  ;;  %v859_v20 = vld [vmem:[#allocation7 + $0x540] sm:$0xff] }
 0x1a5   :  { %938 = vmatpush.msrb.mxu1 %v771_v16  ;;  %963 = vmatpush.msrb.mxu2 %v799_v25  ;;  %v861_v16 = vld [vmem:[#allocation7 + $0x550] sm:$0xff]  ;;  %v736_v26 = vld [vmem:[#allocation7 + $0x168] sm:$0xff] }
 0x1a6   :  { %2103 = vmatmul.msk.f32.gmra.mxu1 %vm521_vm4, %v2481_v55  ;;  %919 = vmatpush.msra.mxu0 %v731_v18  ;;  %v841_v55 = vld [vmem:[#allocation7 + $0x4b0] sm:$0xff]  ;;  %v706_v18 = vld [vmem:[#allocation7 + $0x78] sm:$0xff] }
 0x1a7   :  { %939 = vmatpush.msrb.mxu1 %v769_v19  ;;  %964 = vmatpush.msrb.mxu2 %v797_v29  ;;  %v827_v19 = vld [vmem:[#allocation7 + $0x440] sm:$0xff]  ;;  %v857_v25 = vld [vmem:[#allocation7 + $0x530] sm:$0xff] }
 0x1a8   :  { %920 = vmatpush.msra.mxu0 %v729_v22  ;;  %899 = vmatpush.msrb.mxu3 %v693_v30  ;;  %v704_v22 = vld [vmem:[#allocation7 + $0x68] sm:$0xff]  ;;  %v855_v29 = vld [vmem:[#allocation7 + $0x520] sm:$0xff]  ;;  %v734_v30 = vld [vmem:[#allocation7 + $0x158] sm:$0xff] }
 0x1a9   :  { %940 = vmatpush.msrb.mxu1 %v767_v24  ;;  %965 = vmatpush.msrb.mxu2 %v795_v33  ;;  %v825_v24 = vld [vmem:[#allocation7 + $0x430] sm:$0xff] }
 0x1aa   :  { %921 = vmatpush.msra.mxu0 %v727_v27  ;;  %900 = vmatpush.msrb.mxu3 %v691_v34  ;;  %v702_v27 = vld [vmem:[#allocation7 + $0x58] sm:$0xff]  ;;  %v853_v33 = vld [vmem:[#allocation7 + $0x510] sm:$0xff]  ;;  %v732_v34 = vld [vmem:[#allocation7 + $0x148] sm:$0xff] }
 0x1ab   :  { %941 = vmatpush.msrb.mxu1 %v765_v28  ;;  %966 = vmatpush.msrb.mxu2 %v793_v37  ;;  %v823_v28 = vld [vmem:[#allocation7 + $0x420] sm:$0xff]  ;;  %v694_v37 = vld [vmem:[#allocation7 + $0x18] sm:$0xff] }
 0x1ac   :  { %922 = vmatpush.msra.mxu0 %v725_v31  ;;  %977 = vmatpush.msra.mxu3 %v849_v38  ;;  %v700_v31 = vld [vmem:[#allocation7 + $0x48] sm:$0xff] }
 0x1ad   :  { %942 = vmatpush.msrb.mxu1 %v763_v32  ;;  %967 = vmatpush.msrb.mxu2 %v791_v41  ;;  %v821_v32 = vld [vmem:[#allocation7 + $0x410] sm:$0xff] }
 0x1ae   :  { %923 = vmatpush.msra.mxu0 %v723_v35  ;;  %978 = vmatpush.msra.mxu3 %v847_v42  ;;  %v698_v35 = vld [vmem:[#allocation7 + $0x38] sm:$0xff]  ;;  %v848_v42 = vld [vmem:[#allocation7 + $0x4e8] sm:$0xff] }
 0x1af   :  { %943 = vmatpush.msrb.mxu1 %v761_v36  ;;  %968 = vmatpush.msrb.mxu2 %v789_v45  ;;  %v696_v36 = vld [vmem:[#allocation7 + $0x28] sm:$0xff]  ;;  %v730_v45 = vld [vmem:[#allocation7 + $0x138] sm:$0xff] }
 0x1b0   :  { %1000 = vmatpush.msrb.mxu0 %v881_v39  ;;  %979 = vmatpush.msra.mxu3 %v845_v46  ;;  %v692_v39 = vld [vmem:[#allocation7 + $0x8] sm:$0xff] }
 0x1b1   :  { %944 = vmatpush.msrb.mxu1 %v759_v40  ;;  %969 = vmatpush.msrb.mxu2 %v787_v49  ;;  %v850_v40 = vld [vmem:[#allocation7 + $0x4f8] sm:$0xff]  ;;  %v844_v46 = vld [vmem:[#allocation7 + $0x4c8] sm:$0xff] }
 0x1b2   :  { %1001 = vmatpush.msrb.mxu0 %v879_v43  ;;  %980 = vmatpush.msra.mxu3 %v843_v51  ;;  %v840_v51 = vld [vmem:[#allocation7 + $0x4a8] sm:$0xff] }
 0x1b3   :  { %945 = vmatpush.msrb.mxu1 %v757_v44  ;;  %1046 = vmatpush.msra.mxu2 %v754_v53  ;;  %v846_v44 = vld [vmem:[#allocation7 + $0x4d8] sm:$0xff]  ;;  %v851_v53 = vld [vmem:[#allocation7 + $0x500] sm:$0xff] }
 0x1b4   :  { %1002 = vmatpush.msrb.mxu0 %v877_v47  ;;  %981 = vmatpush.msra.mxu3 %v841_v55  ;;  %v728_v47 = vld [vmem:[#allocation7 + $0x128] sm:$0xff]  ;;  %v786_v55 = vld [vmem:[#allocation7 + $0x2f8] sm:$0xff] }
 0x1b5   :  { %946 = vmatpush.msrb.mxu1 %v755_v48  ;;  %1047 = vmatpush.msra.mxu2 %v752_v57  ;;  %v842_v48 = vld [vmem:[#allocation7 + $0x4b8] sm:$0xff] }
 0x1b6   :  { %1003 = vmatpush.msrb.mxu0 %v875_v52  ;;  %982 = vmatpush.msra.mxu3 %v839_v59  ;;  %v819_v52 = vld [vmem:[#allocation7 + $0x400] sm:$0xff]  ;;  %v838_v57 = vld [vmem:[#allocation7 + $0x498] sm:$0xff]  ;;  %v836_v59 = vld [vmem:[#allocation7 + $0x488] sm:$0xff] }
 0x1b7   :  { %1023 = vmatpush.msra.mxu1 %v722_v50  ;;  %1048 = vmatpush.msra.mxu2 %v750_v61  ;;  %v726_v50 = vld [vmem:[#allocation7 + $0x118] sm:$0xff]  ;;  %v780_v61 = vld [vmem:[#allocation7 + $0x2c8] sm:$0xff] }
 0x1b8   :  { %1004 = vmatpush.msrb.mxu0 %v873_v56  ;;  %983 = vmatpush.msra.mxu3 %v837_v63  ;;  %v784_v56 = vld [vmem:[#allocation7 + $0x2e8] sm:$0xff]  ;;  %v778_v63 = vld [vmem:[#allocation7 + $0x2b8] sm:$0xff] }
 0x1b9   :  { %1024 = vmatpush.msra.mxu1 %v720_v54  ;;  %1049 = vmatpush.msra.mxu2 %v748_v1  ;;  %v724_v54 = vld [vmem:[#allocation7 + $0x108] sm:$0xff]  ;;  %v830_v1 = vld [vmem:[#allocation7 + $0x458] sm:$0xff] }
 0x1ba   :  { %1005 = vmatpush.msrb.mxu0 %v871_v60  ;;  %984 = vmatpush.msra.mxu3 %v835_v3  ;;  %v834_v60 = vld [vmem:[#allocation7 + $0x478] sm:$0xff]  ;;  %v828_v3 = vld [vmem:[#allocation7 + $0x448] sm:$0xff] }
 0x1bb   :  { %1025 = vmatpush.msra.mxu1 %v718_v58  ;;  %1050 = vmatpush.msra.mxu2 %v746_v5  ;;  %v782_v58 = vld [vmem:[#allocation7 + $0x2d8] sm:$0xff]  ;;  %v772_v5 = vld [vmem:[#allocation7 + $0x288] sm:$0xff] }
 0x1bc   :  { %1006 = vmatpush.msrb.mxu0 %v869_v0  ;;  %985 = vmatpush.msra.mxu3 %v833_v7  ;;  %v776_v0 = vld [vmem:[#allocation7 + $0x2a8] sm:$0xff]  ;;  %v770_v7 = vld [vmem:[#allocation7 + $0x278] sm:$0xff] }
 0x1bd   :  { %1026 = vmatpush.msra.mxu1 %v716_v62  ;;  %1051 = vmatpush.msra.mxu2 %v744_v9  ;;  %v832_v62 = vld [vmem:[#allocation7 + $0x468] sm:$0xff]  ;;  %v822_v9 = vld [vmem:[#allocation7 + $0x418] sm:$0xff] }
 0x1be   :  { %1007 = vmatpush.msrb.mxu0 %v867_v4  ;;  %986 = vmatpush.msra.mxu3 %v831_v11  ;;  %v826_v4 = vld [vmem:[#allocation7 + $0x438] sm:$0xff]  ;;  %v820_v11 = vld [vmem:[#allocation7 + $0x408] sm:$0xff] }
 0x1bf   :  { %1027 = vmatpush.msra.mxu1 %v714_v2  ;;  %1052 = vmatpush.msra.mxu2 %v742_v13  ;;  %v774_v2 = vld [vmem:[#allocation7 + $0x298] sm:$0xff] }
 0x1c0   :  { %1008 = vmatpush.msrb.mxu0 %v865_v8  ;;  %987 = vmatpush.msra.mxu3 %v829_v15  ;;  %v768_v8 = vld [vmem:[#allocation7 + $0x268] sm:$0xff]  ;;  %v762_v13 = vld [vmem:[#allocation7 + $0x238] sm:$0xff] }
 0x1c1   :  { %1028 = vmatpush.msra.mxu1 %v712_v6  ;;  %1053 = vmatpush.msra.mxu2 %v740_v17  ;;  %v824_v6 = vld [vmem:[#allocation7 + $0x428] sm:$0xff]  ;;  %v758_v15 = vld [vmem:[#allocation7 + $0x218] sm:$0xff] }
 0x1c2   :  { %1009 = vmatpush.msrb.mxu0 %v863_v12  ;;  %988 = vmatpush.msra.mxu3 %v827_v19  ;;  %v764_v12 = vld [vmem:[#allocation7 + $0x248] sm:$0xff]  ;;  %v818_v17 = vld [vmem:[#allocation7 + $0x3f8] sm:$0xff] }
 0x1c3   :  { %1029 = vmatpush.msra.mxu1 %v710_v10  ;;  %1054 = vmatpush.msra.mxu2 %v738_v21  ;;  %v766_v10 = vld [vmem:[#allocation7 + $0x258] sm:$0xff]  ;;  %v816_v21 = vld [vmem:[#allocation7 + $0x3e8] sm:$0xff] }
 0x1c4   :  { %1010 = vmatpush.msrb.mxu0 %v861_v16  ;;  %989 = vmatpush.msra.mxu3 %v825_v24  ;;  %v756_v16 = vld [vmem:[#allocation7 + $0x208] sm:$0xff]  ;;  %v882_v19 = vld [vmem:[#allocation7 + $0x5f8] sm:$0xff] }
 0x1c5   :  { %1030 = vmatpush.msra.mxu1 %v708_v14  ;;  %1055 = vmatpush.msra.mxu2 %v736_v26  ;;  %v760_v14 = vld [vmem:[#allocation7 + $0x228] sm:$0xff]  ;;  %v814_v24 = vld [vmem:[#allocation7 + $0x3d8] sm:$0xff] }
 0x1c6   :  { %1011 = vmatpush.msrb.mxu0 %v859_v20  ;;  %990 = vmatpush.msra.mxu3 %v823_v28  ;;  %v812_v26 = vld [vmem:[#allocation7 + $0x3c8] sm:$0xff]  ;;  %v810_v28 = vld [vmem:[#allocation7 + $0x3b8] sm:$0xff] }
 0x1c7   :  { %1031 = vmatpush.msra.mxu1 %v706_v18  ;;  %1056 = vmatpush.msra.mxu2 %v734_v30  ;;  %v874_v30 = vld [vmem:[#allocation7 + $0x5b8] sm:$0xff] }
 0x1c8   :  { %1012 = vmatpush.msrb.mxu0 %v857_v25  ;;  %991 = vmatpush.msra.mxu3 %v821_v32  ;;  %v878_v25 = vld [vmem:[#allocation7 + $0x5d8] sm:$0xff]  ;;  %v808_v32 = vld [vmem:[#allocation7 + $0x3a8] sm:$0xff] }
 0x1c9   :  { %1032 = vmatpush.msra.mxu1 %v704_v22  ;;  %1057 = vmatpush.msra.mxu2 %v732_v34  ;;  %v880_v22 = vld [vmem:[#allocation7 + $0x5e8] sm:$0xff]  ;;  %v806_v34 = vld [vmem:[#allocation7 + $0x398] sm:$0xff] }
 0x1ca   :  { %1013 = vmatpush.msrb.mxu0 %v855_v29  ;;  %992 = vmatpush.msra.mxu3 %v819_v52  ;;  %v792_v52 = vld [vmem:[#allocation7 + $0x328] sm:$0xff] }
 0x1cb   :  { %1033 = vmatpush.msra.mxu1 %v702_v27  ;;  %1058 = vmatpush.msra.mxu2 %v730_v45  ;;  %v876_v27 = vld [vmem:[#allocation7 + $0x5c8] sm:$0xff] }
 0x1cc   :  { %1014 = vmatpush.msrb.mxu0 %v853_v33  ;;  %v872_v33 = vld [vmem:[#allocation7 + $0x5a8] sm:$0xff] }
 0x1cd   :  { %1034 = vmatpush.msra.mxu1 %v700_v31  ;;  %1059 = vmatpush.msra.mxu2 %v728_v47  ;;  %v864_v45 = vld [vmem:[#allocation7 + $0x568] sm:$0xff] }
 0x1ce   :  { %1015 = vmatpush.msrb.mxu0 %v851_v53  ;;  %v860_v53 = vld [vmem:[#allocation7 + $0x548] sm:$0xff] }
 0x1cf   :  { %1035 = vmatpush.msra.mxu1 %v698_v35  ;;  %1060 = vmatpush.msra.mxu2 %v726_v50 }
 0x1d1   :  { %1036 = vmatpush.msra.mxu1 %v696_v36  ;;  %1061 = vmatpush.msra.mxu2 %v724_v54  ;;  %v870_v36 = vld [vmem:[#allocation7 + $0x598] sm:$0xff] }
 0x1d2   :  { %v790_v54 = vld [vmem:[#allocation7 + $0x318] sm:$0xff] }
 0x1d3   :  { %1037 = vmatpush.msra.mxu1 %v694_v37  ;;  %v804_v37 = vld [vmem:[#allocation7 + $0x388] sm:$0xff] }
 0x1d5   :  { %1038 = vmatpush.msra.mxu1 %v692_v39 }
 0x1db   :  { %v552_v38 = vpop.f32.mrf.mxu0 }
 0x1dc   :  { %901 = vmatmul.f32.vlgmr.msrb.gmra.mxu3 %v552_v38 }
 0x1dd   :  { %1069 = vmatpush.msrb.mxu3 %v786_v55  ;;  %v858_v55 = vld [vmem:[#allocation7 + $0x538] sm:$0xff] }
 0x1df   :  { %1070 = vmatpush.msrb.mxu3 %v784_v56  ;;  %v788_v56 = vld [vmem:[#allocation7 + $0x308] sm:$0xff] }
 0x1e1   :  { %v2492_v41 = vpop.f32.mrf.mxu2  ;;  %1071 = vmatpush.msrb.mxu3 %v782_v58  ;;  %v854_v58 = vld [vmem:[#allocation7 + $0x518] sm:$0xff] }
 0x1e2   :  { %947 = vmatmul.f32.vlgmr.msrb.gmra.mxu1 %v2492_v41 }
 0x1e3   :  { %v555_v43 = vpop.f32.mrf.mxu0  ;;  %1115 = vmatpush.msrb.mxu1 %v850_v40  ;;  %1072 = vmatpush.msrb.mxu3 %v780_v61  ;;  %v868_v40 = vld [vmem:[#allocation7 + $0x588] sm:$0xff] }
 0x1e4   :  { %904 = vmatmul.f32.gmra.mxu3 %v555_v43 }
 0x1e5   :  { %1116 = vmatpush.msrb.mxu1 %v848_v42  ;;  %1073 = vmatpush.msrb.mxu3 %v778_v63  ;;  %v800_v42 = vld [vmem:[#allocation7 + $0x368] sm:$0xff] }
 0x1e7   :  { %1117 = vmatpush.msrb.mxu1 %v846_v44  ;;  %1074 = vmatpush.msrb.mxu3 %v776_v0  ;;  %v798_v44 = vld [vmem:[#allocation7 + $0x358] sm:$0xff] }
 0x1e9   :  { %v2495_v49 = vpop.f32.mrf.mxu2  ;;  %1118 = vmatpush.msrb.mxu1 %v844_v46  ;;  %1075 = vmatpush.msrb.mxu3 %v774_v2  ;;  %v796_v46 = vld [vmem:[#allocation7 + $0x348] sm:$0xff]  ;;  %v2508_v2 = vld [vmem:[#allocation10] sm:$0x1f] }
 0x1ea   :  { %950 = vmatmul.f32.gmra.mxu1 %v2495_v49 }
 0x1eb   :  { %1119 = vmatpush.msrb.mxu1 %v842_v48  ;;  %1076 = vmatpush.msrb.mxu3 %v772_v5  ;;  %v794_v48 = vld [vmem:[#allocation7 + $0x338] sm:$0xff] }
 0x1ed   :  { %1120 = vmatpush.msrb.mxu1 %v840_v51  ;;  %1077 = vmatpush.msrb.mxu3 %v770_v7  ;;  %v862_v51 = vld [vmem:[#allocation7 + $0x558] sm:$0xff] }
 0x1ef   :  { %1121 = vmatpush.msrb.mxu1 %v838_v57  ;;  %1078 = vmatpush.msrb.mxu3 %v768_v8  ;;  %v856_v57 = vld [vmem:[#allocation7 + $0x528] sm:$0xff] }
 0x1f1   :  { %1122 = vmatpush.msrb.mxu1 %v836_v59  ;;  %1079 = vmatpush.msrb.mxu3 %v766_v10  ;;  %v852_v59 = vld [vmem:[#allocation7 + $0x508] sm:$0xff] }
 0x1f2   :  { %1039 = vmatmul.f32.vlgmr.msra.gmra.mxu1 %v552_v38  ;;  %v802_v38 = vld [vmem:[#allocation7 + $0x378] sm:$0xff] }
 0x1f3   :  { %1123 = vmatpush.msrb.mxu1 %v834_v60  ;;  %1080 = vmatpush.msrb.mxu3 %v764_v12 }
 0x1f5   :  { %1124 = vmatpush.msrb.mxu1 %v832_v62  ;;  %1081 = vmatpush.msrb.mxu3 %v762_v13 }
 0x1f7   :  { %1125 = vmatpush.msrb.mxu1 %v830_v1  ;;  %1082 = vmatpush.msrb.mxu3 %v760_v14 }
 0x1f9   :  { %1126 = vmatpush.msrb.mxu1 %v828_v3  ;;  %1083 = vmatpush.msrb.mxu3 %v758_v15  ;;  %v883_v3 = vperm.slane %v2508_v2, 1 }
 0x1fa   :  { %1042 = vmatmul.f32.gmra.mxu1 %v555_v43  ;;  %v866_v43 = vld [vmem:[#allocation7 + $0x578] sm:$0xff] }
 0x1fb   :  { %1127 = vmatpush.msrb.mxu1 %v826_v4  ;;  %1084 = vmatpush.msrb.mxu3 %v756_v16 }
 0x1fd   :  { %1128 = vmatpush.msrb.mxu1 %v824_v6 }
 0x1ff   :  { %1129 = vmatpush.msrb.mxu1 %v822_v9 }
 0x201   :  { %1130 = vmatpush.msrb.mxu1 %v820_v11 }
 0x20b   :  { %v575_v18 = vpop.f32.mrf.mxu1 }
 0x20c   :  { %v2498_v20 = vpop.f32.mrf.mxu0  ;;  %924 = vmatmul.f32.vlgmr.msra.gmra.mxu0 %v575_v18 }
 0x20d   :  { %970 = vmatmul.f32.vlgmr.msrb.gmra.mxu2 %v2498_v20  ;;  %1092 = vmatpush.msra.mxu0 %v818_v17 }
 0x20e   :  { %1138 = vmatpush.msrb.mxu2 %v882_v19 }
 0x20f   :  { %1093 = vmatpush.msra.mxu0 %v816_v21  ;;  %v884_v21 = vperm.slane %v2467_v23, 1 }
 0x210   :  { %1139 = vmatpush.msrb.mxu2 %v880_v22 }
 0x211   :  { %1094 = vmatpush.msra.mxu0 %v814_v24 }
 0x212   :  { %1140 = vmatpush.msrb.mxu2 %v878_v25 }
 0x213   :  { %v578_v29 = vpop.f32.mrf.mxu1  ;;  %1095 = vmatpush.msra.mxu0 %v812_v26  ;;  %v685_v35 = vpop.f32.mrf.mxu2 }
 0x214   :  { %v2501_v31 = vpop.f32.mrf.mxu0  ;;  %927 = vmatmul.f32.gmra.mxu0 %v578_v29  ;;  %1141 = vmatpush.msrb.mxu2 %v876_v27 }
 0x215   :  { %973 = vmatmul.f32.gmra.mxu2 %v2501_v31  ;;  %1096 = vmatpush.msra.mxu0 %v810_v28 }
 0x216   :  { %1142 = vmatpush.msrb.mxu2 %v874_v30 }
 0x217   :  { %1097 = vmatpush.msra.mxu0 %v808_v32 }
 0x218   :  { %1143 = vmatpush.msrb.mxu2 %v872_v33 }
 0x219   :  { %1098 = vmatpush.msra.mxu0 %v806_v34  ;;  %v2515_v34 = vld [vmem:[#allocation2 + $0x100] sm:$0xf] }
 0x21a   :  { %1144 = vmatpush.msrb.mxu2 %v870_v36 }
 0x21b   :  { %v662_v39 = vpop.f32.mrf.mxu1  ;;  %1099 = vmatpush.msra.mxu0 %v804_v37  ;;  %v688_v47 = vpop.f32.mrf.mxu2 }
 0x21c   :  { %993 = vmatmul.f32.vlgmr.msra.gmra.mxu3 %v662_v39  ;;  %1016 = vmatmul.f32.vlgmr.msrb.gmra.mxu0 %v685_v35 }
 0x21d   :  { %1062 = vmatmul.f32.vlgmr.msra.gmra.mxu2 %v575_v18  ;;  %1100 = vmatpush.msra.mxu0 %v802_v38 }
 0x21e   :  { %1145 = vmatpush.msrb.mxu2 %v868_v40  ;;  %1131 = vmatmul.f32.vlgmr.msrb.gmra.mxu1 %v662_v39 }
 0x21f   :  { %1101 = vmatpush.msra.mxu0 %v800_v42 }
 0x220   :  { %1146 = vmatpush.msrb.mxu2 %v866_v43 }
 0x221   :  { %1102 = vmatpush.msra.mxu0 %v798_v44 }
 0x222   :  { %1147 = vmatpush.msrb.mxu2 %v864_v45 }
 0x223   :  { %v665_v50 = vpop.f32.mrf.mxu1  ;;  %1103 = vmatpush.msra.mxu0 %v796_v46 }
 0x224   :  { %996 = vmatmul.f32.gmra.mxu3 %v665_v50  ;;  %1019 = vmatmul.f32.gmra.mxu0 %v688_v47 }
 0x225   :  { %1065 = vmatmul.f32.gmra.mxu2 %v578_v29  ;;  %1104 = vmatpush.msra.mxu0 %v794_v48  ;;  %v1166_v29 = vld [vmem:[#allocation2 + $0xc0] sm:$0xf]  ;;  %v1338_v48 = vld [vmem:[#allocation7 + $0x6f0] sm:$0xff] }
 0x226   :  { %1148 = vmatpush.msrb.mxu2 %v862_v51  ;;  %1134 = vmatmul.f32.gmra.mxu1 %v665_v50  ;;  %v1336_v50 = vld [vmem:[#allocation7 + $0x6e0] sm:$0xff] }
 0x227   :  { %1105 = vmatpush.msra.mxu0 %v792_v52 }
 0x228   :  { %1149 = vmatpush.msrb.mxu2 %v860_v53  ;;  %v1334_v53 = vld [vmem:[#allocation7 + $0x6d0] sm:$0xff] }
 0x229   :  { %1106 = vmatpush.msra.mxu0 %v790_v54 }
 0x22a   :  { %1150 = vmatpush.msrb.mxu2 %v858_v55  ;;  %v1332_v55 = vld [vmem:[#allocation7 + $0x6c0] sm:$0xff] }
 0x22b   :  { %1107 = vmatpush.msra.mxu0 %v788_v56 }
 0x22c   :  { %1085 = vmatmul.f32.vlgmr.msrb.gmra.mxu3 %v2492_v41  ;;  %1108 = vmatmul.f32.vlgmr.msra.gmra.mxu0 %v2498_v20 }
 0x22d   :  { %1151 = vmatpush.msrb.mxu2 %v856_v57  ;;  %v1402_v57 = vld [vmem:[#allocation7 + $0x8f0] sm:$0xff] }
 0x22f   :  { %1152 = vmatpush.msrb.mxu2 %v854_v58  ;;  %v1330_v58 = vld [vmem:[#allocation7 + $0x6b0] sm:$0xff] }
 0x231   :  { %1153 = vmatpush.msrb.mxu2 %v852_v59  ;;  %v1400_v59 = vld [vmem:[#allocation7 + $0x8e0] sm:$0xff] }
 0x232   :  { %1154 = vmatmul.f32.vlgmr.msrb.gmra.mxu2 %v685_v35 }
 0x233   :  { %1502 = vmatpush.msra.mxu2 %v1338_v48  ;;  %v1339_v48 = vld [vmem:[#allocation7 + $0x6f8] sm:$0xff] }
 0x234   :  { %1088 = vmatmul.f32.gmra.mxu3 %v2495_v49  ;;  %1111 = vmatmul.f32.gmra.mxu0 %v2501_v31 }
 0x235   :  { %1503 = vmatpush.msra.mxu2 %v1336_v50  ;;  %v1354_v50 = vld [vmem:[#allocation7 + $0x770] sm:$0xff] }
 0x237   :  { %1504 = vmatpush.msra.mxu2 %v1334_v53  ;;  %v1337_v53 = vld [vmem:[#allocation7 + $0x6e8] sm:$0xff] }
 0x239   :  { %1505 = vmatpush.msra.mxu2 %v1332_v55  ;;  %v1406_v55 = vld [vmem:[#allocation7 + $0x910] sm:$0xff] }
 0x23a   :  { %1157 = vmatmul.f32.gmra.mxu2 %v688_v47 }
 0x23b   :  { %1506 = vmatpush.msra.mxu2 %v1330_v58  ;;  %v1350_v58 = vld [vmem:[#allocation7 + $0x750] sm:$0xff] }
 0x25f   :  { %v948_v61 = vpop.f32.mrf.mxu1  ;;  %v902_v62 = vpop.f32.mrf.mxu3 }
 0x260   :  { %v903_v6 = vadd.f32 %v902_v62, %v883_v3  ;;  %v1434_v62 = vld [vmem:[#allocation7 + $0x9f0] sm:$0xff] }
 0x261   :  { %1562 = vmatpush.msra.mxu1 %v1434_v62  ;;  %v1348_v62 = vld [vmem:[#allocation7 + $0x740] sm:$0xff] }
 0x267   :  { %v951_v1 = vpop.f32.mrf.mxu1  ;;  %v905_v41 = vpop.f32.mrf.mxu3 }
 0x268   :  { %v906_v8 = vadd.f32 %v905_v41, %v883_v3  ;;  %v1394_v41 = vld [vmem:[#allocation7 + $0x8b0] sm:$0xff]  ;;  %v1324_v3 = vld [vmem:[#allocation7 + $0x680] sm:$0xff] }
 0x26f   :  { %v1040_v49 = vpop.f32.mrf.mxu1 }
 0x270   :  { %v1041_v27 = vadd.f32 %v1040_v49, %v884_v21  ;;  %v1428_v49 = vld [vmem:[#allocation7 + $0x9c0] sm:$0xff] }
 0x277   :  { %v1043_v20 = vpop.f32.mrf.mxu1 }
 0x278   :  { %v1044_v35 = vadd.f32 %v1043_v20, %v884_v21  ;;  %v1382_v20 = vld [vmem:[#allocation7 + $0x850] sm:$0xff]  ;;  %v1368_v21 = vld [vmem:[#allocation7 + $0x7e0] sm:$0xff] }
 0x289   :  { %v925_v60 = vpop.f32.mrf.mxu0 }
 0x28a   :  { %v926_v7 = vadd.f32 %v925_v60, %v903_v6  ;;  %v1398_v60 = vld [vmem:[#allocation7 + $0x8d0] sm:$0xff]  ;;  %v1392_v6 = vld [vmem:[#allocation7 + $0x8a0] sm:$0xff] }
 0x28c   :  { %v949_v12 = vadd.f32 %v948_v61, %v926_v7  ;;  %v1328_v61 = vld [vmem:[#allocation7 + $0x6a0] sm:$0xff]  ;;  %v1322_v7 = vld [vmem:[#allocation7 + $0x670] sm:$0xff] }
 0x28d   :  { %1507 = vmatpush.msra.mxu2 %v1328_v61  ;;  %v1333_v61 = vld [vmem:[#allocation7 + $0x6c8] sm:$0xff] }
 0x290   :  { %v971_v63 = vpop.f32.mrf.mxu2 }
 0x291   :  { %v928_v0 = vpop.f32.mrf.mxu0  ;;  %v972_v13 = vadd.f32 %v971_v63, %v949_v12  ;;  %v1396_v63 = vld [vmem:[#allocation7 + $0x8c0] sm:$0xff]  ;;  %v1318_v12 = vld [vmem:[#allocation7 + $0x650] sm:$0xff] }
 0x292   :  { %v929_v10 = vadd.f32 %v928_v0, %v906_v8  ;;  %v1326_v0 = vld [vmem:[#allocation7 + $0x690] sm:$0xff] }
 0x293   :  { %1508 = vmatpush.msra.mxu2 %v1326_v0  ;;  %v1390_v8 = vld [vmem:[#allocation7 + $0x890] sm:$0xff] }
 0x294   :  { %v952_v14 = vadd.f32 %v951_v1, %v929_v10  ;;  %v1432_v1 = vld [vmem:[#allocation7 + $0x9e0] sm:$0xff]  ;;  %v1450_v0 = vld [vmem:[#allocation7 + $0xa70] sm:$0xff] }
 0x295   :  { %1563 = vmatpush.msra.mxu1 %v1432_v1  ;;  %1509 = vmatpush.msra.mxu2 %v1324_v3  ;;  %v1388_v10 = vld [vmem:[#allocation7 + $0x880] sm:$0xff]  ;;  %v1331_v1 = vld [vmem:[#allocation7 + $0x6b8] sm:$0xff]  ;;  %v1369_v3 = vld [vmem:[#allocation7 + $0x7e8] sm:$0xff] }
 0x297   :  { %1510 = vmatpush.msra.mxu2 %v1322_v7  ;;  %v1342_v7 = vld [vmem:[#allocation7 + $0x710] sm:$0xff] }
 0x298   :  { %v974_v4 = vpop.f32.mrf.mxu2 }
 0x299   :  { %v1017_v5 = vpop.f32.mrf.mxu0  ;;  %v975_v16 = vadd.f32 %v974_v4, %v952_v14  ;;  %v1430_v4 = vld [vmem:[#allocation7 + $0x9d0] sm:$0xff]  ;;  %v1424_v14 = vld [vmem:[#allocation7 + $0x9a0] sm:$0xff] }
 0x29a   :  { %1564 = vmatpush.msra.mxu1 %v1430_v4  ;;  %v1448_v4 = vld [vmem:[#allocation7 + $0xa60] sm:$0xff] }
 0x29b   :  { %v1132_v33 = vpop.f32.mrf.mxu1 }
 0x29c   :  { %1565 = vmatpush.msra.mxu1 %v1428_v49  ;;  %v1340_v49 = vld [vmem:[#allocation7 + $0x700] sm:$0xff] }
 0x29f   :  { %v994_v9 = vpop.f32.mrf.mxu3 }
 0x2a0   :  { %v1063_v11 = vpop.f32.mrf.mxu2  ;;  %v995_v17 = vadd.f32 %v994_v9, %v972_v13  ;;  %v1320_v9 = vld [vmem:[#allocation7 + $0x660] sm:$0xff]  ;;  %v1386_v13 = vld [vmem:[#allocation7 + $0x870] sm:$0xff] }
 0x2a1   :  { %v1020_v15 = vpop.f32.mrf.mxu0  ;;  %v1064_v32 = vadd.f32 %v1063_v11, %v1041_v27  ;;  %v1426_v11 = vld [vmem:[#allocation7 + $0x9b0] sm:$0xff]  ;;  %1511 = vmatpush.msra.mxu2 %v1320_v9 }
 0x2a2   :  { %v1018_v22 = vadd.f32 %v1017_v5, %v995_v17  ;;  %v1218_v5 = vld [vmem:[#allocation2 + $0xe0] sm:$0xf]  ;;  %1566 = vmatpush.msra.mxu1 %v1426_v11  ;;  %v1370_v17 = vld [vmem:[#allocation7 + $0x7f0] sm:$0xff]  ;;  %v1496_v11 = vld [vmem:[#allocation7 + $0xbe0] sm:$0xff] }
 0x2a3   :  { %v1135_v45 = vpop.f32.mrf.mxu1  ;;  %1512 = vmatpush.msra.mxu2 %v1318_v12  ;;  %v1310_v27 = vld [vmem:[#allocation7 + $0x610] sm:$0xff]  ;;  %v1440_v12 = vld [vmem:[#allocation7 + $0xa20] sm:$0xff] }
 0x2a4   :  { %v1161_v28 = vmax.f32 %v1018_v22, 0.0  ;;  %1567 = vmatpush.msra.mxu1 %v1424_v14  ;;  %v1312_v22 = vld [vmem:[#allocation7 + $0x620] sm:$0xff]  ;;  %v1498_v9 = vld [vmem:[#allocation7 + $0xbf0] sm:$0xff] }
 0x2a5   :  { %v1438_v14 = vld [vmem:[#allocation7 + $0xa10] sm:$0xff] }
 0x2a7   :  { %v997_v18 = vpop.f32.mrf.mxu3 }
 0x2a8   :  { %v998_v19 = vadd.f32 %v997_v18, %v975_v16  ;;  %v1066_v25 = vpop.f32.mrf.mxu2  ;;  %v1384_v16 = vld [vmem:[#allocation7 + $0x860] sm:$0xff]  ;;  %v1314_v18 = vld [vmem:[#allocation7 + $0x630] sm:$0xff] }
 0x2a9   :  { %v1109_v30 = vpop.f32.mrf.mxu0  ;;  %v1067_v37 = vadd.f32 %v1066_v25, %v1044_v35  ;;  %v1380_v25 = vld [vmem:[#allocation7 + $0x840] sm:$0xff] }
 0x2aa   :  { %v1021_v24 = vadd.f32 %v1020_v15, %v998_v19  ;;  %v1316_v15 = vld [vmem:[#allocation7 + $0x640] sm:$0xff]  ;;  %v1422_v19 = vld [vmem:[#allocation7 + $0x990] sm:$0xff] }
 0x2ab   :  { %1513 = vmatpush.msra.mxu2 %v1316_v15  ;;  %1568 = vmatpush.msra.mxu1 %v1422_v19  ;;  %v1464_v35 = vld [vmem:[#allocation7 + $0xae0] sm:$0xff] }
 0x2ac   :  { %v1163_v26 = vmax.f32 %v1021_v24, 0.0  ;;  %v1420_v24 = vld [vmem:[#allocation7 + $0x980] sm:$0xff] }
 0x2ad   :  { %1514 = vmatpush.msra.mxu2 %v1314_v18  ;;  %1569 = vmatpush.msra.mxu1 %v1420_v24  ;;  %v1492_v15 = vld [vmem:[#allocation7 + $0xbc0] sm:$0xff]  ;;  %v1486_v18 = vld [vmem:[#allocation7 + $0xb90] sm:$0xff]  ;;  %v1329_v24 = vld [vmem:[#allocation7 + $0x6a8] sm:$0xff] }
 0x2ae   :  { %2107 = vmatpush.msk.msra.mxu3 %vm528_vm3, %v1163_v26  ;;  %2115 = vmatpush.msk.msrb.mxu0 %vm528_vm3, %v1163_v26  ;;  %v1484_v19 = vld [vmem:[#allocation7 + $0xb80] sm:$0xff] }
 0x2af   :  { %v1086_v31 = vpop.f32.mrf.mxu3  ;;  %1515 = vmatpush.msra.mxu2 %v1312_v22  ;;  %v1480_v22 = vld [vmem:[#allocation7 + $0xb60] sm:$0xff] }
 0x2b0   :  { %1192 = vmatpush.msra.mxu3 %v1161_v28  ;;  %1282 = vmatpush.msrb.mxu0 %v1161_v28  ;;  %v1087_v23 = vadd.f32 %v1086_v31, %v1064_v32  ;;  %v1308_v31 = vld [vmem:[#allocation7 + $0x600] sm:$0xff]  ;;  %v1466_v32 = vld [vmem:[#allocation7 + $0xaf0] sm:$0xff] }
 0x2b1   :  { %2108 = vmatmul.msk.f32.vlgmr.msra.gmra.mxu3 %vm1167_vm5, %v1166_v29  ;;  %2116 = vmatmul.msk.f32.vlgmr.msrb.gmra.mxu0 %vm1167_vm5, %v2515_v34  ;;  %v1112_v42 = vpop.f32.mrf.mxu0 }
 0x2b2   :  { %v1110_v38 = vadd.f32 %v1109_v30, %v1087_v23  ;;  %1542 = vmatpush.msra.mxu0 %v1402_v57  ;;  %v1364_v30 = vld [vmem:[#allocation7 + $0x7c0] sm:$0xff]  ;;  %1516 = vmatpush.msra.mxu2 %v1310_v27  ;;  %v1335_v57 = vld [vmem:[#allocation7 + $0x6d8] sm:$0xff] }
 0x2b3   :  { %v1416_v23 = vld [vmem:[#allocation7 + $0x960] sm:$0xff]  ;;  %v1327_v27 = vld [vmem:[#allocation7 + $0x698] sm:$0xff] }
 0x2b4   :  { %v1133_v43 = vadd.f32 %v1132_v33, %v1110_v38  ;;  %1543 = vmatpush.msra.mxu0 %v1400_v59  ;;  %v1362_v33 = vld [vmem:[#allocation7 + $0x7b0] sm:$0xff]  ;;  %1517 = vmatpush.msra.mxu2 %v1308_v31  ;;  %v1404_v59 = vld [vmem:[#allocation7 + $0x900] sm:$0xff]  ;;  %v1363_v31 = vld [vmem:[#allocation7 + $0x7b8] sm:$0xff] }
 0x2b5   :  { %v1155_v36 = vpop.f32.mrf.mxu2  ;;  %v1414_v38 = vld [vmem:[#allocation7 + $0x950] sm:$0xff] }
 0x2b6   :  { %v1156_v51 = vadd.f32 %v1155_v36, %v1133_v43  ;;  %1544 = vmatpush.msra.mxu0 %v1398_v60  ;;  %v1376_v36 = vld [vmem:[#allocation7 + $0x820] sm:$0xff]  ;;  %1582 = vmatpush.msrb.mxu2 %v1466_v32  ;;  %v1474_v32 = vld [vmem:[#allocation7 + $0xb30] sm:$0xff] }
 0x2b7   :  { %v1089_v39 = vpop.f32.mrf.mxu3  ;;  %v1412_v43 = vld [vmem:[#allocation7 + $0x940] sm:$0xff] }
 0x2b8   :  { %v1090_v40 = vadd.f32 %v1089_v39, %v1067_v37  ;;  %v1162_v56 = vmax.f32 %v1156_v51, 0.0  ;;  %1545 = vmatpush.msra.mxu0 %v1396_v63  ;;  %v1360_v37 = vld [vmem:[#allocation7 + $0x7a0] sm:$0xff]  ;;  %v1462_v39 = vld [vmem:[#allocation7 + $0xad0] sm:$0xff]  ;;  %1583 = vmatpush.msrb.mxu2 %v1464_v35  ;;  %v1371_v63 = vld [vmem:[#allocation7 + $0x7f8] sm:$0xff] }
 0x2b9   :  { %v1408_v51 = vld [vmem:[#allocation7 + $0x920] sm:$0xff] }
 0x2ba   :  { %v1113_v44 = vadd.f32 %v1112_v42, %v1090_v40  ;;  %1546 = vmatpush.msra.mxu0 %v1394_v41  ;;  %v1374_v40 = vld [vmem:[#allocation7 + $0x810] sm:$0xff]  ;;  %1584 = vmatpush.msrb.mxu2 %v1462_v39  ;;  %v1452_v60 = vld [vmem:[#allocation7 + $0xa80] sm:$0xff]  ;;  %v1319_v39 = vld [vmem:[#allocation7 + $0x658] sm:$0xff] }
 0x2bb   :  { %v1358_v42 = vld [vmem:[#allocation7 + $0x790] sm:$0xff]  ;;  %v1472_v35 = vld [vmem:[#allocation7 + $0xb20] sm:$0xff] }
 0x2bc   :  { %v1136_v46 = vadd.f32 %v1135_v45, %v1113_v44  ;;  %1547 = vmatpush.msra.mxu0 %v1392_v6  ;;  %v1460_v44 = vld [vmem:[#allocation7 + $0xac0] sm:$0xff]  ;;  %v1346_v41 = vld [vmem:[#allocation7 + $0x730] sm:$0xff] }
 0x2bd   :  { %v1158_v47 = vpop.f32.mrf.mxu2  ;;  %v1372_v45 = vld [vmem:[#allocation7 + $0x800] sm:$0xff]  ;;  %1585 = vmatpush.msrb.mxu2 %v1460_v44  ;;  %v1446_v6 = vld [vmem:[#allocation7 + $0xa50] sm:$0xff]  ;;  %v1355_v44 = vld [vmem:[#allocation7 + $0x778] sm:$0xff] }
 0x2be   :  { %v1159_v52 = vadd.f32 %v1158_v47, %v1136_v46  ;;  %1548 = vmatpush.msra.mxu0 %v1390_v8  ;;  %v1356_v46 = vld [vmem:[#allocation7 + $0x780] sm:$0xff]  ;;  %v1410_v47 = vld [vmem:[#allocation7 + $0x930] sm:$0xff] }
 0x2bf   :  { %v1444_v8 = vld [vmem:[#allocation7 + $0xa40] sm:$0xff] }
 0x2c0   :  { %v1164_v54 = vmax.f32 %v1159_v52, 0.0  ;;  %1549 = vmatpush.msra.mxu0 %v1388_v10  ;;  %v1456_v52 = vld [vmem:[#allocation7 + $0xaa0] sm:$0xff]  ;;  %v1442_v10 = vld [vmem:[#allocation7 + $0xa30] sm:$0xff] }
 0x2c2   :  { %2109 = vmatpush.msk.msrb.mxu3 %vm528_vm3, %v1164_v54  ;;  %1550 = vmatpush.msra.mxu0 %v1386_v13  ;;  %v1494_v13 = vld [vmem:[#allocation7 + $0xbd0] sm:$0xff] }
 0x2c4   :  { %1212 = vmatpush.msrb.mxu3 %v1162_v56  ;;  %1551 = vmatpush.msra.mxu0 %v1384_v16  ;;  %v1490_v16 = vld [vmem:[#allocation7 + $0xbb0] sm:$0xff] }
 0x2c5   :  { %2110 = vmatmul.msk.f32.vlgmr.msrb.gmra.mxu3 %vm1167_vm5, %v1166_v29  ;;  %v1378_v29 = vld [vmem:[#allocation7 + $0x830] sm:$0xff] }
 0x2c6   :  { %2111 = vmatpush.msk.msra.mxu3 %vm528_vm3, %v1163_v26  ;;  %v1366_v26 = vld [vmem:[#allocation7 + $0x7d0] sm:$0xff]  ;;  %1552 = vmatpush.msra.mxu0 %v1382_v20 }
 0x2c7   :  { %v1482_v20 = vld [vmem:[#allocation7 + $0xb70] sm:$0xff] }
 0x2c8   :  { %1237 = vmatpush.msra.mxu3 %v1161_v28  ;;  %v1418_v28 = vld [vmem:[#allocation7 + $0x970] sm:$0xff]  ;;  %1553 = vmatpush.msra.mxu0 %v1380_v25  ;;  %v1367_v25 = vld [vmem:[#allocation7 + $0x7d8] sm:$0xff] }
 0x2c9   :  { %1570 = vmatpush.msra.mxu1 %v1418_v28  ;;  %v1365_v28 = vld [vmem:[#allocation7 + $0x7c8] sm:$0xff] }
 0x2ca   :  { %2113 = vmatpush.msk.msrb.mxu3 %vm528_vm3, %v1164_v54  ;;  %1554 = vmatpush.msra.mxu0 %v1378_v29  ;;  %v1476_v29 = vld [vmem:[#allocation7 + $0xb40] sm:$0xff] }
 0x2cb   :  { %1571 = vmatpush.msra.mxu1 %v1416_v23  ;;  %v1361_v23 = vld [vmem:[#allocation7 + $0x7a8] sm:$0xff] }
 0x2cc   :  { %1257 = vmatpush.msrb.mxu3 %v1162_v56  ;;  %1555 = vmatpush.msra.mxu0 %v1376_v36  ;;  %v1321_v36 = vld [vmem:[#allocation7 + $0x668] sm:$0xff] }
 0x2cd   :  { %2112 = vmatmul.msk.f32.vlgmr.msra.gmra.mxu3 %vm1167_vm5, %v1218_v5  ;;  %1572 = vmatpush.msra.mxu1 %v1414_v38  ;;  %v1470_v38 = vld [vmem:[#allocation7 + $0xb10] sm:$0xff] }
 0x2ce   :  { %2117 = vmatpush.msk.msra.mxu3 %vm528_vm3, %v1164_v54  ;;  %1556 = vmatpush.msra.mxu0 %v1374_v40  ;;  %v1352_v54 = vld [vmem:[#allocation7 + $0x760] sm:$0xff]  ;;  %v1357_v40 = vld [vmem:[#allocation7 + $0x788] sm:$0xff] }
 0x2cf   :  { %1573 = vmatpush.msra.mxu1 %v1412_v43  ;;  %v1317_v43 = vld [vmem:[#allocation7 + $0x648] sm:$0xff] }
 0x2d0   :  { %1302 = vmatpush.msra.mxu3 %v1162_v56  ;;  %1557 = vmatpush.msra.mxu0 %v1372_v45  ;;  %v1454_v56 = vld [vmem:[#allocation7 + $0xa90] sm:$0xff]  ;;  %v1315_v45 = vld [vmem:[#allocation7 + $0x638] sm:$0xff] }
 0x2d1   :  { %1574 = vmatpush.msra.mxu1 %v1410_v47  ;;  %v1313_v47 = vld [vmem:[#allocation7 + $0x628] sm:$0xff] }
 0x2d2   :  { %1622 = vmatpush.msrb.mxu0 %v1339_v48  ;;  %v1311_v48 = vld [vmem:[#allocation7 + $0x618] sm:$0xff] }
 0x2d3   :  { %1575 = vmatpush.msra.mxu1 %v1408_v51  ;;  %v1309_v51 = vld [vmem:[#allocation7 + $0x608] sm:$0xff] }
 0x2d4   :  { %1623 = vmatpush.msrb.mxu0 %v1337_v53  ;;  %v1345_v53 = vld [vmem:[#allocation7 + $0x728] sm:$0xff] }
 0x2d5   :  { %2114 = vmatmul.msk.f32.vlgmr.msrb.gmra.mxu3 %vm1167_vm5, %v1218_v5  ;;  %1576 = vmatpush.msra.mxu1 %v1406_v55  ;;  %v1344_v5 = vld [vmem:[#allocation7 + $0x720] sm:$0xff] }
 0x2d6   :  { %1522 = vmatpush.msrb.mxu3 %v1370_v17  ;;  %1624 = vmatpush.msrb.mxu0 %v1335_v57  ;;  %v1488_v17 = vld [vmem:[#allocation7 + $0xba0] sm:$0xff]  ;;  %v1401_v57 = vld [vmem:[#allocation7 + $0x8e8] sm:$0xff] }
 0x2d7   :  { %1577 = vmatpush.msra.mxu1 %v1404_v59  ;;  %v1341_v59 = vld [vmem:[#allocation7 + $0x708] sm:$0xff] }
 0x2d8   :  { %1523 = vmatpush.msrb.mxu3 %v1368_v21  ;;  %1625 = vmatpush.msrb.mxu0 %v1333_v61  ;;  %v1436_v21 = vld [vmem:[#allocation7 + $0xa00] sm:$0xff] }
 0x2d9   :  { %1642 = vmatpush.msrb.mxu1 %v1371_v63  ;;  %v1393_v63 = vld [vmem:[#allocation7 + $0x8a8] sm:$0xff] }
 0x2da   :  { %1524 = vmatpush.msrb.mxu3 %v1366_v26  ;;  %1626 = vmatpush.msrb.mxu0 %v1331_v1  ;;  %v1478_v26 = vld [vmem:[#allocation7 + $0xb50] sm:$0xff]  ;;  %v1389_v1 = vld [vmem:[#allocation7 + $0x888] sm:$0xff] }
 0x2db   :  { %1643 = vmatpush.msrb.mxu1 %v1369_v3  ;;  %v1385_v3 = vld [vmem:[#allocation7 + $0x868] sm:$0xff] }
 0x2dc   :  { %1525 = vmatpush.msrb.mxu3 %v1364_v30  ;;  %1627 = vmatpush.msrb.mxu0 %v1329_v24  ;;  %v1325_v30 = vld [vmem:[#allocation7 + $0x688] sm:$0xff]  ;;  %v1499_v24 = vld [vmem:[#allocation7 + $0xbf8] sm:$0xff] }
 0x2dd   :  { %2118 = vmatmul.msk.f32.vlgmr.msra.gmra.mxu3 %vm1167_vm5, %v2515_v34  ;;  %v1458_v34 = vld [vmem:[#allocation7 + $0xab0] sm:$0xff]  ;;  %1644 = vmatpush.msrb.mxu1 %v1367_v25  ;;  %v1419_v25 = vld [vmem:[#allocation7 + $0x978] sm:$0xff] }
 0x2de   :  { %1526 = vmatpush.msrb.mxu3 %v1362_v33  ;;  %1586 = vmatpush.msrb.mxu2 %v1458_v34  ;;  %v1323_v33 = vld [vmem:[#allocation7 + $0x678] sm:$0xff] }
 0x2df   :  { %1628 = vmatpush.msrb.mxu0 %v1327_v27  ;;  %1645 = vmatpush.msrb.mxu1 %v1365_v28  ;;  %v1351_v34 = vld [vmem:[#allocation7 + $0x758] sm:$0xff]  ;;  %v1497_v28 = vld [vmem:[#allocation7 + $0xbe8] sm:$0xff] }
 0x2e0   :  { %1527 = vmatpush.msrb.mxu3 %v1360_v37  ;;  %1587 = vmatpush.msrb.mxu2 %v1456_v52  ;;  %v1359_v37 = vld [vmem:[#allocation7 + $0x798] sm:$0xff] }
 0x2e1   :  { %1629 = vmatpush.msrb.mxu0 %v1325_v30  ;;  %1646 = vmatpush.msrb.mxu1 %v1363_v31  ;;  %v1347_v52 = vld [vmem:[#allocation7 + $0x738] sm:$0xff]  ;;  %v1457_v30 = vld [vmem:[#allocation7 + $0xaa8] sm:$0xff] }
 0x2e2   :  { %1528 = vmatpush.msrb.mxu3 %v1358_v42  ;;  %1588 = vmatpush.msrb.mxu2 %v1454_v56  ;;  %v1468_v42 = vld [vmem:[#allocation7 + $0xb00] sm:$0xff]  ;;  %v1343_v56 = vld [vmem:[#allocation7 + $0x718] sm:$0xff] }
 0x2e3   :  { %1630 = vmatpush.msrb.mxu0 %v1323_v33  ;;  %1647 = vmatpush.msrb.mxu1 %v1361_v23  ;;  %v1459_v27 = vld [vmem:[#allocation7 + $0xab8] sm:$0xff]  ;;  %v1493_v23 = vld [vmem:[#allocation7 + $0xbc8] sm:$0xff] }
 0x2e4   :  { %1529 = vmatpush.msrb.mxu3 %v1356_v46  ;;  %1589 = vmatpush.msrb.mxu2 %v1452_v60  ;;  %v1353_v46 = vld [vmem:[#allocation7 + $0x768] sm:$0xff]  ;;  %v1495_v31 = vld [vmem:[#allocation7 + $0xbd8] sm:$0xff] }
 0x2e5   :  { %1631 = vmatpush.msrb.mxu0 %v1321_v36  ;;  %1648 = vmatpush.msrb.mxu1 %v1359_v37  ;;  %v1397_v60 = vld [vmem:[#allocation7 + $0x8c8] sm:$0xff]  ;;  %v1455_v33 = vld [vmem:[#allocation7 + $0xa98] sm:$0xff] }
 0x2e6   :  { %1530 = vmatpush.msrb.mxu3 %v1354_v50  ;;  %1590 = vmatpush.msrb.mxu2 %v1450_v0  ;;  %v1349_v50 = vld [vmem:[#allocation7 + $0x748] sm:$0xff]  ;;  %v1391_v0 = vld [vmem:[#allocation7 + $0x898] sm:$0xff] }
 0x2e7   :  { %1632 = vmatpush.msrb.mxu0 %v1319_v39  ;;  %1649 = vmatpush.msrb.mxu1 %v1357_v40  ;;  %v1453_v36 = vld [vmem:[#allocation7 + $0xa88] sm:$0xff]  ;;  %v1411_v37 = vld [vmem:[#allocation7 + $0x938] sm:$0xff] }
 0x2e8   :  { %1531 = vmatpush.msrb.mxu3 %v1352_v54  ;;  %1591 = vmatpush.msrb.mxu2 %v1448_v4  ;;  %v1403_v54 = vld [vmem:[#allocation7 + $0x8f8] sm:$0xff] }
 0x2e9   :  { %1633 = vmatpush.msrb.mxu0 %v1317_v43  ;;  %1650 = vmatpush.msrb.mxu1 %v1355_v44  ;;  %v1435_v4 = vld [vmem:[#allocation7 + $0x9f8] sm:$0xff]  ;;  %v1489_v43 = vld [vmem:[#allocation7 + $0xba8] sm:$0xff] }
 0x2ea   :  { %1532 = vmatpush.msrb.mxu3 %v1350_v58  ;;  %1592 = vmatpush.msrb.mxu2 %v1446_v6  ;;  %v1399_v58 = vld [vmem:[#allocation7 + $0x8d8] sm:$0xff]  ;;  %v1449_v44 = vld [vmem:[#allocation7 + $0xa68] sm:$0xff] }
 0x2eb   :  { %1634 = vmatpush.msrb.mxu0 %v1315_v45  ;;  %1651 = vmatpush.msrb.mxu1 %v1353_v46  ;;  %v1491_v39 = vld [vmem:[#allocation7 + $0xbb8] sm:$0xff] }
 0x2ec   :  { %1533 = vmatpush.msrb.mxu3 %v1348_v62  ;;  %1593 = vmatpush.msrb.mxu2 %v1444_v8  ;;  %v1395_v62 = vld [vmem:[#allocation7 + $0x8b8] sm:$0xff]  ;;  %v1381_v8 = vld [vmem:[#allocation7 + $0x848] sm:$0xff] }
 0x2ed   :  { %1635 = vmatpush.msrb.mxu0 %v1313_v47  ;;  %1652 = vmatpush.msrb.mxu1 %v1351_v34  ;;  %v1451_v40 = vld [vmem:[#allocation7 + $0xa78] sm:$0xff]  ;;  %v1405_v34 = vld [vmem:[#allocation7 + $0x908] sm:$0xff] }
 0x2ee   :  { %1534 = vmatpush.msrb.mxu3 %v1346_v41  ;;  %1594 = vmatpush.msrb.mxu2 %v1442_v10  ;;  %v1387_v41 = vld [vmem:[#allocation7 + $0x878] sm:$0xff]  ;;  %v1429_v10 = vld [vmem:[#allocation7 + $0x9c8] sm:$0xff] }
 0x2ef   :  { %1636 = vmatpush.msrb.mxu0 %v1311_v48  ;;  %1653 = vmatpush.msrb.mxu1 %v1349_v50  ;;  %v1407_v45 = vld [vmem:[#allocation7 + $0x918] sm:$0xff]  ;;  %v1485_v48 = vld [vmem:[#allocation7 + $0xb88] sm:$0xff] }
 0x2f0   :  { %1535 = vmatpush.msrb.mxu3 %v1344_v5  ;;  %1595 = vmatpush.msrb.mxu2 %v1440_v12  ;;  %v1383_v5 = vld [vmem:[#allocation7 + $0x858] sm:$0xff]  ;;  %v1445_v50 = vld [vmem:[#allocation7 + $0xa48] sm:$0xff] }
 0x2f1   :  { %1637 = vmatpush.msrb.mxu0 %v1309_v51  ;;  %1654 = vmatpush.msrb.mxu1 %v1347_v52  ;;  %v1427_v12 = vld [vmem:[#allocation7 + $0x9b8] sm:$0xff] }
 0x2f2   :  { %1536 = vmatpush.msrb.mxu3 %v1342_v7  ;;  %1596 = vmatpush.msrb.mxu2 %v1438_v14  ;;  %v1433_v7 = vld [vmem:[#allocation7 + $0x9e8] sm:$0xff]  ;;  %v1487_v46 = vld [vmem:[#allocation7 + $0xb98] sm:$0xff] }
 0x2f3   :  { %1655 = vmatpush.msrb.mxu1 %v1345_v53  ;;  %v1447_v47 = vld [vmem:[#allocation7 + $0xa58] sm:$0xff]  ;;  %v1481_v53 = vld [vmem:[#allocation7 + $0xb68] sm:$0xff] }
 0x2f4   :  { %1537 = vmatpush.msrb.mxu3 %v1340_v49  ;;  %1597 = vmatpush.msrb.mxu2 %v1436_v21  ;;  %v1431_v49 = vld [vmem:[#allocation7 + $0x9d8] sm:$0xff]  ;;  %v1421_v21 = vld [vmem:[#allocation7 + $0x988] sm:$0xff] }
 0x2f5   :  { %1656 = vmatpush.msrb.mxu1 %v1343_v56  ;;  %v1483_v51 = vld [vmem:[#allocation7 + $0xb78] sm:$0xff] }
 0x2f6   :  { %1602 = vmatpush.msra.mxu3 %v1498_v9  ;;  %v1379_v9 = vld [vmem:[#allocation7 + $0x838] sm:$0xff] }
 0x2f7   :  { %1657 = vmatpush.msrb.mxu1 %v1341_v59  ;;  %v1443_v52 = vld [vmem:[#allocation7 + $0xa38] sm:$0xff] }
 0x2f8   :  { %1603 = vmatpush.msra.mxu3 %v1496_v11  ;;  %v1377_v11 = vld [vmem:[#allocation7 + $0x828] sm:$0xff]  ;;  %v1439_v56 = vld [vmem:[#allocation7 + $0xa18] sm:$0xff] }
 0x2f9   :  { %v1475_v59 = vld [vmem:[#allocation7 + $0xb38] sm:$0xff] }
 0x2fa   :  { %1604 = vmatpush.msra.mxu3 %v1494_v13  ;;  %v1467_v13 = vld [vmem:[#allocation7 + $0xaf8] sm:$0xff] }
 0x2fc   :  { %1605 = vmatpush.msra.mxu3 %v1492_v15  ;;  %v1375_v15 = vld [vmem:[#allocation7 + $0x818] sm:$0xff] }
 0x2fe   :  { %1606 = vmatpush.msra.mxu3 %v1490_v16  ;;  %v1425_v16 = vld [vmem:[#allocation7 + $0x9a8] sm:$0xff] }
 0x300   :  { %1607 = vmatpush.msra.mxu3 %v1488_v17  ;;  %v1465_v17 = vld [vmem:[#allocation7 + $0xae8] sm:$0xff] }
 0x302   :  { %1608 = vmatpush.msra.mxu3 %v1486_v18  ;;  %v1373_v18 = vld [vmem:[#allocation7 + $0x808] sm:$0xff] }
 0x304   :  { %1609 = vmatpush.msra.mxu3 %v1484_v19  ;;  %v1423_v19 = vld [vmem:[#allocation7 + $0x998] sm:$0xff] }
 0x306   :  { %1610 = vmatpush.msra.mxu3 %v1482_v20  ;;  %v1463_v20 = vld [vmem:[#allocation7 + $0xad8] sm:$0xff] }
 0x308   :  { %1611 = vmatpush.msra.mxu3 %v1480_v22  ;;  %v1461_v22 = vld [vmem:[#allocation7 + $0xac8] sm:$0xff] }
 0x30a   :  { %1612 = vmatpush.msra.mxu3 %v1478_v26 }
 0x30c   :  { %1613 = vmatpush.msra.mxu3 %v1476_v29  ;;  %v1417_v29 = vld [vmem:[#allocation7 + $0x968] sm:$0xff] }
 0x30e   :  { %1614 = vmatpush.msra.mxu3 %v1474_v32  ;;  %v1415_v32 = vld [vmem:[#allocation7 + $0x958] sm:$0xff] }
 0x310   :  { %1615 = vmatpush.msra.mxu3 %v1472_v35  ;;  %v1413_v35 = vld [vmem:[#allocation7 + $0x948] sm:$0xff] }
 0x312   :  { %1616 = vmatpush.msra.mxu3 %v1470_v38 }
 0x314   :  { %1617 = vmatpush.msra.mxu3 %v1468_v42  ;;  %v1409_v42 = vld [vmem:[#allocation7 + $0x928] sm:$0xff] }
 0x32e   :  { %v2531_v61 = vpop.f32.mrf.mxu0 }
 0x334   :  { %v2528_v55 = vpop.f32.mrf.mxu3 }
 0x335   :  { %1518 = vmatmul.f32.vlgmr.msra.gmra.mxu2 %v2528_v55 }
 0x336   :  { %1662 = vmatpush.msra.mxu2 %v1403_v54  ;;  %v1441_v54 = vld [vmem:[#allocation7 + $0xa28] sm:$0xff] }
 0x338   :  { %1663 = vmatpush.msra.mxu2 %v1401_v57  ;;  %v1477_v57 = vld [vmem:[#allocation7 + $0xb48] sm:$0xff] }
 0x33a   :  { %1664 = vmatpush.msra.mxu2 %v1399_v58  ;;  %v1437_v58 = vld [vmem:[#allocation7 + $0xa08] sm:$0xff] }
 0x33c   :  { %1665 = vmatpush.msra.mxu2 %v1397_v60  ;;  %v1473_v60 = vld [vmem:[#allocation7 + $0xb28] sm:$0xff] }
 0x33d   :  { %1598 = vmatmul.f32.vlgmr.msrb.gmra.mxu2 %v2531_v61 }
 0x33e   :  { %1666 = vmatpush.msra.mxu2 %v1395_v62  ;;  %v1471_v62 = vld [vmem:[#allocation7 + $0xb18] sm:$0xff] }
 0x340   :  { %1667 = vmatpush.msra.mxu2 %v1393_v63  ;;  %v1469_v63 = vld [vmem:[#allocation7 + $0xb08] sm:$0xff] }
 0x342   :  { %1668 = vmatpush.msra.mxu2 %v1391_v0  ;;  %v1500_v0 = vperm.slane %v2508_v2, 2 }
 0x344   :  { %1669 = vmatpush.msra.mxu2 %v1389_v1 }
 0x346   :  { %1670 = vmatpush.msra.mxu2 %v1387_v41 }
 0x348   :  { %v2534_v6 = vpop.f32.mrf.mxu3  ;;  %1671 = vmatpush.msra.mxu2 %v1385_v3 }
 0x349   :  { %1538 = vmatmul.f32.vlgmr.msrb.gmra.mxu3 %v2534_v6 }
 0x34a   :  { %1682 = vmatpush.msrb.mxu3 %v1435_v4  ;;  %1672 = vmatpush.msra.mxu2 %v1383_v5 }
 0x34c   :  { %1683 = vmatpush.msrb.mxu3 %v1433_v7  ;;  %1673 = vmatpush.msra.mxu2 %v1381_v8 }
 0x34e   :  { %1684 = vmatpush.msrb.mxu3 %v1431_v49  ;;  %1674 = vmatpush.msra.mxu2 %v1379_v9  ;;  %v1855_v49 = vld [vmem:[#allocation8 + $0x78] sm:$0xff]  ;;  %v1854_v9 = vld [vmem:[#allocation8 + $0x70] sm:$0xff] }
 0x350   :  { %v1239_v14 = vpop.f32.mrf.mxu3  ;;  %1685 = vmatpush.msrb.mxu3 %v1429_v10  ;;  %1675 = vmatpush.msra.mxu2 %v1377_v11 }
 0x351   :  { %1558 = vmatmul.f32.vlgmr.msra.gmra.mxu0 %v1239_v14 }
 0x352   :  { %1686 = vmatpush.msrb.mxu3 %v1427_v12  ;;  %1702 = vmatpush.msra.mxu0 %v1467_v13  ;;  %v1853_v12 = vld [vmem:[#allocation8 + $0x68] sm:$0xff] }
 0x353   :  { %1676 = vmatpush.msra.mxu2 %v1375_v15  ;;  %v1852_v15 = vld [vmem:[#allocation8 + $0x60] sm:$0xff] }
 0x354   :  { %1687 = vmatpush.msrb.mxu3 %v1425_v16  ;;  %1703 = vmatpush.msra.mxu0 %v1465_v17 }
 0x355   :  { %1677 = vmatpush.msra.mxu2 %v1373_v18  ;;  %v1745_v18 = vld [vmem:[#allocation2 + $0x120] sm:$0x3] }
 0x356   :  { %1688 = vmatpush.msrb.mxu3 %v1423_v19  ;;  %1704 = vmatpush.msra.mxu0 %v1463_v20  ;;  %v1796_v19 = vld [vmem:[#allocation2 + $0x140] sm:$0x3]  ;;  %v1887_v20 = vld [vmem:[#allocation8 + $0x178] sm:$0xff] }
 0x357   :  { %1678 = vmatmul.f32.vlgmr.msra.gmra.mxu2 %v1239_v14  ;;  %v2154_v14 = vld [vmem:[#allocation10 + $0x8] sm:$0x1f] }
 0x358   :  { %v1259_v26 = vpop.f32.mrf.mxu3  ;;  %1689 = vmatpush.msrb.mxu3 %v1421_v21  ;;  %1705 = vmatpush.msra.mxu0 %v1461_v22  ;;  %v1501_v2 = vperm.slane %v2154_v14, 2  ;;  %v1851_v21 = vld [vmem:[#allocation8 + $0x58] sm:$0xff]  ;;  %v1857_v14 = vld [vmem:[#allocation8 + $0x88] sm:$0xff] }
 0x359   :  { %1578 = vmatmul.f32.vlgmr.msra.gmra.mxu1 %v1259_v26  ;;  %1638 = vmatmul.f32.vlgmr.msrb.gmra.mxu0 %v2528_v55  ;;  %v1479_v55 = vld [vmem:[#allocation7 + $0xb58] sm:$0xff] }
 0x35a   :  { %1722 = vmatpush.msra.mxu1 %v1499_v24  ;;  %1690 = vmatpush.msrb.mxu3 %v1419_v25  ;;  %v1886_v25 = vld [vmem:[#allocation8 + $0x170] sm:$0xff] }
 0x35b   :  { %1706 = vmatpush.msra.mxu0 %v1459_v27 }
 0x35c   :  { %1723 = vmatpush.msra.mxu1 %v1497_v28  ;;  %1691 = vmatpush.msrb.mxu3 %v1417_v29  ;;  %v1885_v28 = vld [vmem:[#allocation8 + $0x168] sm:$0xff] }
 0x35d   :  { %1707 = vmatpush.msra.mxu0 %v1457_v30  ;;  %v1849_v29 = vld [vmem:[#allocation8 + $0x48] sm:$0xff]  ;;  %v1884_v30 = vld [vmem:[#allocation8 + $0x160] sm:$0xff] }
 0x35e   :  { %1724 = vmatpush.msra.mxu1 %v1495_v31  ;;  %1692 = vmatpush.msrb.mxu3 %v1415_v32  ;;  %v1848_v31 = vld [vmem:[#allocation8 + $0x40] sm:$0xff] }
 0x35f   :  { %1708 = vmatpush.msra.mxu0 %v1455_v33 }
 0x360   :  { %1725 = vmatpush.msra.mxu1 %v1493_v23  ;;  %v1304_v38 = vpop.f32.mrf.mxu3  ;;  %1693 = vmatpush.msrb.mxu3 %v1413_v35  ;;  %v1883_v35 = vld [vmem:[#allocation8 + $0x158] sm:$0xff] }
 0x361   :  { %1709 = vmatpush.msra.mxu0 %v1453_v36  ;;  %1618 = vmatmul.f32.vlgmr.msra.gmra.mxu3 %v1304_v38  ;;  %v1847_v36 = vld [vmem:[#allocation8 + $0x38] sm:$0xff] }
 0x362   :  { %1658 = vmatmul.f32.vlgmr.msrb.gmra.mxu1 %v2534_v6  ;;  %1694 = vmatpush.msrb.mxu3 %v1411_v37 }
 0x363   :  { %1726 = vmatpush.msra.mxu1 %v1491_v39  ;;  %1710 = vmatpush.msra.mxu0 %v1451_v40  ;;  %v1881_v40 = vld [vmem:[#allocation8 + $0x148] sm:$0xff] }
 0x364   :  { %1695 = vmatpush.msrb.mxu3 %v1409_v42 }
 0x365   :  { %1727 = vmatpush.msra.mxu1 %v1489_v43  ;;  %1711 = vmatpush.msra.mxu0 %v1449_v44  ;;  %v1880_v43 = vld [vmem:[#allocation8 + $0x140] sm:$0xff] }
 0x366   :  { %1696 = vmatpush.msrb.mxu3 %v1407_v45 }
 0x367   :  { %1728 = vmatpush.msra.mxu1 %v1487_v46  ;;  %1712 = vmatpush.msra.mxu0 %v1447_v47  ;;  %v1879_v46 = vld [vmem:[#allocation8 + $0x138] sm:$0xff] }
 0x368   :  { %1697 = vmatpush.msrb.mxu3 %v1405_v34  ;;  %v1871_v34 = vld [vmem:[#allocation8 + $0xf8] sm:$0xff] }
 0x369   :  { %1729 = vmatpush.msra.mxu1 %v1485_v48  ;;  %1713 = vmatpush.msra.mxu0 %v1445_v50  ;;  %v1903_v48 = vld [vmem:[#allocation8 + $0x1f8] sm:$0xff]  ;;  %v1878_v50 = vld [vmem:[#allocation8 + $0x130] sm:$0xff] }
 0x36a   :  { %1698 = vmatmul.f32.vlgmr.msrb.gmra.mxu3 %v1259_v26  ;;  %v1850_v26 = vld [vmem:[#allocation8 + $0x50] sm:$0xff] }
 0x36b   :  { %1730 = vmatpush.msra.mxu1 %v1483_v51  ;;  %1714 = vmatpush.msra.mxu0 %v1443_v52  ;;  %v1870_v51 = vld [vmem:[#allocation8 + $0xf0] sm:$0xff] }
 0x36c   :  { %v1902_v52 = vld [vmem:[#allocation8 + $0x1f0] sm:$0xff] }
 0x36d   :  { %1731 = vmatpush.msra.mxu1 %v1481_v53  ;;  %1715 = vmatpush.msra.mxu0 %v1441_v54  ;;  %v1869_v53 = vld [vmem:[#allocation8 + $0xe8] sm:$0xff] }
 0x36e   :  { %v1901_v54 = vld [vmem:[#allocation8 + $0x1e8] sm:$0xff] }
 0x36f   :  { %1732 = vmatpush.msra.mxu1 %v1479_v55  ;;  %1716 = vmatpush.msra.mxu0 %v1439_v56  ;;  %v1868_v55 = vld [vmem:[#allocation8 + $0xe0] sm:$0xff] }
 0x370   :  { %v1900_v56 = vld [vmem:[#allocation8 + $0x1e0] sm:$0xff] }
 0x371   :  { %1733 = vmatpush.msra.mxu1 %v1477_v57  ;;  %1717 = vmatpush.msra.mxu0 %v1437_v58  ;;  %v1867_v57 = vld [vmem:[#allocation8 + $0xd8] sm:$0xff] }
 0x372   :  { %1718 = vmatmul.f32.vlgmr.msra.gmra.mxu0 %v2531_v61  ;;  %v1899_v58 = vld [vmem:[#allocation8 + $0x1d8] sm:$0xff] }
 0x373   :  { %1734 = vmatpush.msra.mxu1 %v1475_v59  ;;  %v1866_v59 = vld [vmem:[#allocation8 + $0xd0] sm:$0xff] }
 0x375   :  { %1735 = vmatpush.msra.mxu1 %v1473_v60  ;;  %v1898_v60 = vld [vmem:[#allocation8 + $0x1d0] sm:$0xff] }
 0x377   :  { %1736 = vmatpush.msra.mxu1 %v1471_v62  ;;  %v1865_v62 = vld [vmem:[#allocation8 + $0xc8] sm:$0xff] }
 0x379   :  { %1737 = vmatpush.msra.mxu1 %v1469_v63  ;;  %v1864_v63 = vld [vmem:[#allocation8 + $0xc0] sm:$0xff] }
 0x37a   :  { %1738 = vmatmul.f32.vlgmr.msra.gmra.mxu1 %v1304_v38  ;;  %v1882_v38 = vld [vmem:[#allocation8 + $0x150] sm:$0xff] }
 0x37b   :  { %1905 = vmatpush.msrb.mxu1 %v1855_v49  ;;  %v1876_v49 = vld [vmem:[#allocation8 + $0x120] sm:$0xff] }
 0x37d   :  { %1906 = vmatpush.msrb.mxu1 %v1854_v9  ;;  %v1844_v9 = vld [vmem:[#allocation8 + $0x20] sm:$0xff] }
 0x37f   :  { %1907 = vmatpush.msrb.mxu1 %v1853_v12  ;;  %v1895_v12 = vld [vmem:[#allocation8 + $0x1b8] sm:$0xff] }
 0x381   :  { %1908 = vmatpush.msrb.mxu1 %v1852_v15  ;;  %v1894_v15 = vld [vmem:[#allocation8 + $0x1b0] sm:$0xff] }
 0x383   :  { %1909 = vmatpush.msrb.mxu1 %v1851_v21  ;;  %v1893_v21 = vld [vmem:[#allocation8 + $0x1a8] sm:$0xff] }
 0x385   :  { %1910 = vmatpush.msrb.mxu1 %v1850_v26  ;;  %v2001_v26 = vld [vmem:[#allocation8 + $0x278] sm:$0xff] }
 0x387   :  { %1911 = vmatpush.msrb.mxu1 %v1849_v29  ;;  %v1999_v29 = vld [vmem:[#allocation8 + $0x268] sm:$0xff] }
 0x389   :  { %1912 = vmatpush.msrb.mxu1 %v1848_v31  ;;  %v1998_v31 = vld [vmem:[#allocation8 + $0x260] sm:$0xff] }
 0x38b   :  { %1913 = vmatpush.msrb.mxu1 %v1847_v36 }
 0x3b8   :  { %v1519_v1 = vpop.f32.mrf.mxu2 }
 0x3b9   :  { %v1520_v3 = vadd.f32 %v1519_v1, %v1500_v0  ;;  %v1863_v0 = vld [vmem:[#allocation8 + $0xb8] sm:$0xff]  ;;  %v1862_v1 = vld [vmem:[#allocation8 + $0xb0] sm:$0xff] }
 0x3c0   :  { %v1599_v61 = vpop.f32.mrf.mxu2 }
 0x3cc   :  { %v1539_v41 = vpop.f32.mrf.mxu3 }
 0x3cd   :  { %v1540_v4 = vadd.f32 %v1539_v41, %v1520_v3  ;;  %v1861_v41 = vld [vmem:[#allocation8 + $0xa8] sm:$0xff]  ;;  %v1846_v3 = vld [vmem:[#allocation8 + $0x30] sm:$0xff] }
 0x3ce   :  { %v1559_v5 = vpop.f32.mrf.mxu0  ;;  %1914 = vmatpush.msrb.mxu1 %v1846_v3 }
 0x3cf   :  { %v1560_v7 = vadd.f32 %v1559_v5, %v1540_v4  ;;  %v1860_v4 = vld [vmem:[#allocation8 + $0xa0] sm:$0xff]  ;;  %v1877_v5 = vld [vmem:[#allocation8 + $0x128] sm:$0xff] }
 0x3d6   :  { %v1579_v6 = vpop.f32.mrf.mxu1  ;;  %v1639_v16 = vpop.f32.mrf.mxu0 }
 0x3d7   :  { %v1580_v8 = vadd.f32 %v1579_v6, %v1560_v7  ;;  %v1640_v24 = vadd.f32 %v1639_v16, %v1501_v2  ;;  %v1897_v6 = vld [vmem:[#allocation8 + $0x1c8] sm:$0xff]  ;;  %v1874_v2 = vld [vmem:[#allocation8 + $0x110] sm:$0xff] }
 0x3d8   :  { %v1845_v7 = vld [vmem:[#allocation8 + $0x28] sm:$0xff]  ;;  %v1842_v16 = vld [vmem:[#allocation8 + $0x10] sm:$0xff] }
 0x3d9   :  { %v1600_v10 = vadd.f32 %v1599_v61, %v1580_v8  ;;  %v1859_v8 = vld [vmem:[#allocation8 + $0x98] sm:$0xff]  ;;  %v1896_v61 = vld [vmem:[#allocation8 + $0x1c0] sm:$0xff]  ;;  %1915 = vmatpush.msrb.mxu1 %v1845_v7 }
 0x3da   :  { %v1679_v32 = vpop.f32.mrf.mxu2 }
 0x3db   :  { %1916 = vmatpush.msrb.mxu1 %v1844_v9 }
 0x3df   :  { %v1659_v22 = vpop.f32.mrf.mxu1 }
 0x3e0   :  { %v1660_v27 = vadd.f32 %v1659_v22, %v1640_v24  ;;  %v1872_v22 = vld [vmem:[#allocation8 + $0x100] sm:$0xff] }
 0x3e1   :  { %v1892_v24 = vld [vmem:[#allocation8 + $0x1a0] sm:$0xff] }
 0x3e2   :  { %v1680_v23 = vadd.f32 %v1679_v32, %v1660_v27  ;;  %v2000_v27 = vld [vmem:[#allocation8 + $0x270] sm:$0xff]  ;;  %v1888_v32 = vld [vmem:[#allocation8 + $0x180] sm:$0xff] }
 0x3e4   :  { %v1619_v11 = vpop.f32.mrf.mxu3 }
 0x3e5   :  { %v1620_v13 = vadd.f32 %v1619_v11, %v1600_v10  ;;  %v1858_v10 = vld [vmem:[#allocation8 + $0x90] sm:$0xff]  ;;  %v1875_v11 = vld [vmem:[#allocation8 + $0x118] sm:$0xff] }
 0x3e7   :  { %v1742_v17 = vmax.f32 %v1620_v13, 0.0  ;;  %v1843_v13 = vld [vmem:[#allocation8 + $0x18] sm:$0xff] }
 0x3e8   :  { %1917 = vmatpush.msrb.mxu1 %v1843_v13 }
 0x3e9   :  { %2119 = vmatpush.msk.msrb.mxu2 %vm127_vm0, %v1742_v17  ;;  %2123 = vmatpush.msk.msra.mxu3 %vm127_vm0, %v1742_v17  ;;  %v1841_v17 = vld [vmem:[#allocation8 + $0x8] sm:$0xff] }
 0x3ea   :  { %2120 = vmatmul.msk.f32.vlgmr.msrb.gmra.mxu2 %vm259_vm2, %v1745_v18  ;;  %2124 = vmatmul.msk.f32.vlgmr.msra.gmra.mxu3 %vm259_vm2, %v1796_v19 }
 0x3eb   :  { %1945 = vmatpush.msrb.mxu3 %v1887_v20  ;;  %1918 = vmatpush.msrb.mxu1 %v1842_v16  ;;  %v1873_v20 = vld [vmem:[#allocation8 + $0x108] sm:$0xff] }
 0x3ed   :  { %1946 = vmatpush.msrb.mxu3 %v1886_v25  ;;  %v1699_v33 = vpop.f32.mrf.mxu3  ;;  %1919 = vmatpush.msrb.mxu1 %v1841_v17  ;;  %v1891_v25 = vld [vmem:[#allocation8 + $0x198] sm:$0xff] }
 0x3ee   :  { %v1700_v37 = vadd.f32 %v1699_v33, %v1680_v23  ;;  %v1997_v33 = vld [vmem:[#allocation8 + $0x258] sm:$0xff]  ;;  %v1996_v23 = vld [vmem:[#allocation8 + $0x250] sm:$0xff] }
 0x3ef   :  { %1947 = vmatpush.msrb.mxu3 %v1885_v28  ;;  %v1719_v39 = vpop.f32.mrf.mxu0  ;;  %v1890_v28 = vld [vmem:[#allocation8 + $0x190] sm:$0xff] }
 0x3f0   :  { %v1720_v42 = vadd.f32 %v1719_v39, %v1700_v37  ;;  %v1995_v37 = vld [vmem:[#allocation8 + $0x248] sm:$0xff]  ;;  %v1993_v39 = vld [vmem:[#allocation8 + $0x238] sm:$0xff] }
 0x3f1   :  { %1948 = vmatpush.msrb.mxu3 %v1884_v30  ;;  %v1889_v30 = vld [vmem:[#allocation8 + $0x188] sm:$0xff] }
 0x3f3   :  { %1949 = vmatpush.msrb.mxu3 %v1883_v35 }
 0x3f5   :  { %1950 = vmatpush.msrb.mxu3 %v1882_v38  ;;  %v1994_v38 = vld [vmem:[#allocation8 + $0x240] sm:$0xff] }
 0x3f7   :  { %v1739_v44 = vpop.f32.mrf.mxu1  ;;  %1951 = vmatpush.msrb.mxu3 %v1881_v40  ;;  %v1992_v40 = vld [vmem:[#allocation8 + $0x230] sm:$0xff] }
 0x3f8   :  { %v1740_v45 = vadd.f32 %v1739_v44, %v1720_v42  ;;  %v1991_v44 = vld [vmem:[#allocation8 + $0x228] sm:$0xff] }
 0x3f9   :  { %1952 = vmatpush.msrb.mxu3 %v1880_v43 }
 0x3fa   :  { %v1743_v47 = vmax.f32 %v1740_v45, 0.0  ;;  %v1990_v45 = vld [vmem:[#allocation8 + $0x220] sm:$0xff] }
 0x3fb   :  { %1953 = vmatpush.msrb.mxu3 %v1879_v46  ;;  %v1989_v46 = vld [vmem:[#allocation8 + $0x218] sm:$0xff] }
 0x3fc   :  { %2121 = vmatpush.msk.msra.mxu2 %vm127_vm0, %v1743_v47  ;;  %2125 = vmatpush.msk.msrb.mxu0 %vm127_vm0, %v1743_v47  ;;  %v1988_v47 = vld [vmem:[#allocation8 + $0x210] sm:$0xff] }
 0x3fd   :  { %2122 = vmatmul.msk.f32.vlgmr.msra.gmra.mxu2 %vm259_vm2, %v1745_v18  ;;  %2126 = vmatmul.msk.f32.vlgmr.msrb.gmra.mxu0 %vm259_vm2, %v1796_v19  ;;  %v1840_v18 = vld [vmem:[#allocation8] sm:$0xff] }
 0x3fe   :  { %1925 = vmatpush.msrb.mxu2 %v1871_v34  ;;  %1965 = vmatpush.msra.mxu0 %v1903_v48  ;;  %v1856_v19 = vld [vmem:[#allocation8 + $0x80] sm:$0xff]  ;;  %v1987_v34 = vld [vmem:[#allocation8 + $0x208] sm:$0xff] }
 0x3ff   :  { %1954 = vmatpush.msrb.mxu3 %v1878_v50  ;;  %1920 = vmatpush.msrb.mxu1 %v1840_v18  ;;  %v1986_v48 = vld [vmem:[#allocation8 + $0x200] sm:$0xff] }
 0x400   :  { %1926 = vmatpush.msrb.mxu2 %v1870_v51  ;;  %1966 = vmatpush.msra.mxu0 %v1902_v52  ;;  %v2155_v50 = vld [vmem:[#allocation10] sm:$0x1f] }
 0x401   :  { %1955 = vmatpush.msrb.mxu3 %v1877_v5  ;;  %2003 = vmatpush.msra.mxu1 %v2001_v26  ;;  %v1904_v51 = vperm.slane %v2155_v50, 3 }
 0x402   :  { %1927 = vmatpush.msrb.mxu2 %v1869_v53  ;;  %1967 = vmatpush.msra.mxu0 %v1901_v54 }
 0x403   :  { %1956 = vmatpush.msrb.mxu3 %v1876_v49  ;;  %2004 = vmatpush.msra.mxu1 %v2000_v27 }
 0x404   :  { %1928 = vmatpush.msrb.mxu2 %v1868_v55  ;;  %1968 = vmatpush.msra.mxu0 %v1900_v56 }
 0x405   :  { %1957 = vmatpush.msrb.mxu3 %v1875_v11  ;;  %2005 = vmatpush.msra.mxu1 %v1999_v29 }
 0x406   :  { %1929 = vmatpush.msrb.mxu2 %v1867_v57  ;;  %1969 = vmatpush.msra.mxu0 %v1899_v58 }
 0x407   :  { %1958 = vmatpush.msrb.mxu3 %v1874_v2  ;;  %2006 = vmatpush.msra.mxu1 %v1998_v31 }
 0x408   :  { %1930 = vmatpush.msrb.mxu2 %v1866_v59  ;;  %1970 = vmatpush.msra.mxu0 %v1898_v60 }
 0x409   :  { %1959 = vmatpush.msrb.mxu3 %v1873_v20  ;;  %2007 = vmatpush.msra.mxu1 %v1997_v33 }
 0x40a   :  { %1931 = vmatpush.msrb.mxu2 %v1865_v62  ;;  %1971 = vmatpush.msra.mxu0 %v1897_v6  ;;  %v2002_v62 = vperm.slane %v2155_v50, 4 }
 0x40b   :  { %1960 = vmatpush.msrb.mxu3 %v1872_v22  ;;  %2008 = vmatpush.msra.mxu1 %v1996_v23 }
 0x40c   :  { %1932 = vmatpush.msrb.mxu2 %v1864_v63  ;;  %1972 = vmatpush.msra.mxu0 %v1896_v61 }
 0x40d   :  { %2009 = vmatpush.msra.mxu1 %v1995_v37 }
 0x40e   :  { %1933 = vmatpush.msrb.mxu2 %v1863_v0  ;;  %1973 = vmatpush.msra.mxu0 %v1895_v12 }
 0x40f   :  { %2010 = vmatpush.msra.mxu1 %v1994_v38 }
 0x410   :  { %1934 = vmatpush.msrb.mxu2 %v1862_v1  ;;  %1974 = vmatpush.msra.mxu0 %v1894_v15 }
 0x411   :  { %2011 = vmatpush.msra.mxu1 %v1993_v39 }
 0x412   :  { %1935 = vmatpush.msrb.mxu2 %v1861_v41  ;;  %1975 = vmatpush.msra.mxu0 %v1893_v21 }
 0x413   :  { %2012 = vmatpush.msra.mxu1 %v1992_v40 }
 0x414   :  { %1936 = vmatpush.msrb.mxu2 %v1860_v4  ;;  %1976 = vmatpush.msra.mxu0 %v1892_v24 }
 0x415   :  { %2013 = vmatpush.msra.mxu1 %v1991_v44 }
 0x416   :  { %1937 = vmatpush.msrb.mxu2 %v1859_v8  ;;  %1977 = vmatpush.msra.mxu0 %v1891_v25 }
 0x417   :  { %2014 = vmatpush.msra.mxu1 %v1990_v45 }
 0x418   :  { %1938 = vmatpush.msrb.mxu2 %v1858_v10  ;;  %1978 = vmatpush.msra.mxu0 %v1890_v28 }
 0x419   :  { %2015 = vmatpush.msra.mxu1 %v1989_v46 }
 0x41a   :  { %1939 = vmatpush.msrb.mxu2 %v1857_v14  ;;  %1979 = vmatpush.msra.mxu0 %v1889_v30 }
 0x41b   :  { %2016 = vmatpush.msra.mxu1 %v1988_v47 }
 0x41c   :  { %1940 = vmatpush.msrb.mxu2 %v1856_v19  ;;  %1980 = vmatpush.msra.mxu0 %v1888_v32 }
 0x41d   :  { %2017 = vmatpush.msra.mxu1 %v1987_v34 }
 0x41f   :  { %2018 = vmatpush.msra.mxu1 %v1986_v48 }
 0x46d   :  { %v1772_v35 = vpop.f32.mrf.mxu2  ;;  %v1817_v36 = vpop.f32.mrf.mxu3 }
 0x46e   :  { %1961 = vmatmul.f32.vlgmr.msrb.gmra.mxu3 %v1817_v36  ;;  %1921 = vmatmul.f32.vlgmr.msrb.gmra.mxu1 %v1772_v35 }
 0x47a   :  { %v1837_v42 = vpop.f32.mrf.mxu0 }
 0x47b   :  { %1981 = vmatmul.f32.vlgmr.msra.gmra.mxu0 %v1837_v42 }
 0x480   :  { %v1792_v43 = vpop.f32.mrf.mxu2 }
 0x481   :  { %1941 = vmatmul.f32.vlgmr.msrb.gmra.mxu2 %v1792_v43 }
 0x4eb   :  { %v1922_v52 = vpop.f32.mrf.mxu1 }
 0x4ec   :  { %v1923_v53 = vadd.f32 %v1922_v52, %v1904_v51 }
 0x4f1   :  { %v1962_v55 = vpop.f32.mrf.mxu3 }
 0x4f8   :  { %v1982_v57 = vpop.f32.mrf.mxu0 }
 0x504   :  { %v1942_v54 = vpop.f32.mrf.mxu2 }
 0x505   :  { %v1943_v56 = vadd.f32 %v1942_v54, %v1923_v53 }
 0x507   :  { %v1963_v58 = vadd.f32 %v1962_v55, %v1943_v56 }
 0x509   :  { %v1983_v59 = vadd.f32 %v1982_v57, %v1963_v58 }
 0x50b   :  { %v1985_v60 = vmax.f32 %v1983_v59, 0.0 }
 0x50d   :  { %2019 = vmatmul.f32.vlgmr.msra.gmra.mxu1 %v1985_v60 }
 0x58a   :  { %v2020_v63 = vpop.f32.mrf.mxu1 }
 0x58b   :  { %v2021_v0 = vadd.f32 %v2020_v63, %v2002_v62 }
 0x58d   :  { %2024 = vst.msk [vmem:[#allocation11] sm:$0x3] %vm2023_vm6, %v2021_v0 }
 0x58e   :  { %2035 = dma.vmem_to_hbm [thread:$0]  %s2031_s12, 32, %s2033_s15, [#allocation4]  }
 0x58f   :  { %2306 = dma.done.wait [#allocation4], 32  }
 0x590   :  { %2307 = vsyncadd [#allocation4], 4294967264 }
 0x591   :  { %2040 = vsyncpa [#allocation3], 1 }
 0x592   :  { %2041 = vsyncpa [#allocation6], 1 }
 0x593   :  { %2042 = vsyncpa [#allocation9], 1 }
 0x594   :  { %2043 = vsyncpa [#allocation4], 1 }

</bundles_post_ra>
